<compile_context>
chip_gen: v5e
topology: v5e:2x2
jax: 0.10.0
libtpu: 0.0.40
codegen_flags: <defaults>
</compile_context>

<pallas_src>
import jax
import jax.numpy as jnp
from jax.experimental import pallas as pl
from jax.experimental.pallas import tpu as pltpu

NEG_SLOPE = 0.2      # GATv2Conv default negative_slope
MASK_NEG = -1e30     # additive mask value for segment max


# ----------------------------------------------------------------------------
# One GATv2Conv layer on dense one-hot selectors (pure jnp, traced inside kernel)
# ----------------------------------------------------------------------------
def _gatv2_dense(x, ea_lin, src_oh, dst_oh, dst_oh_t, neg_mask,
                 wl, bl, wr, br, attm, expm, bias,
                 *, H, C, concat, apply_elu, gather_first):
    HC = H * C
    if gather_first:
        # F_in < H*C: gather the narrow raw features, then transform per edge.
        # Selector matmul cost drops from E*N*HC to E*N*F.
        x_src = jnp.dot(src_oh, x, preferred_element_type=jnp.float32)          # (E, F)
        x_dst = jnp.dot(dst_oh, x, preferred_element_type=jnp.float32)          # (E, F)
        xl_src = jnp.dot(x_src, wl, preferred_element_type=jnp.float32) + bl    # (E, HC)
        xr_dst = jnp.dot(x_dst, wr, preferred_element_type=jnp.float32) + br    # (E, HC)
    else:
        # F_in >= H*C: transform on nodes first, gather the narrow outputs.
        xl = jnp.dot(x, wl, preferred_element_type=jnp.float32) + bl            # (N, HC)
        xr = jnp.dot(x, wr, preferred_element_type=jnp.float32) + br            # (N, HC)
        xl_src = jnp.dot(src_oh, xl, preferred_element_type=jnp.float32)        # (E, HC)
        xr_dst = jnp.dot(dst_oh, xr, preferred_element_type=jnp.float32)        # (E, HC)

    m = xl_src + xr_dst + ea_lin                                        # (E, HC)
    m = jnp.where(m > 0, m, NEG_SLOPE * m)                              # leaky_relu

    # attention logits for ALL heads at once via block-diagonal att matrix
    logit = jnp.dot(m, attm, preferred_element_type=jnp.float32)        # (E, H)

    # per-destination-node (segment) max, per head, via shared additive mask
    maxes = []
    for h in range(H):
        masked = neg_mask + logit[:, h:h + 1]                           # (E, N)
        maxes.append(jnp.max(masked, axis=0, keepdims=True))            # (1, N)
    node_max = jnp.concatenate(maxes, axis=0) if H > 1 else maxes[0]    # (H, N)
    # gather segment max back to edges as one matmul
    edge_max = jnp.dot(dst_oh, node_max.T,
                       preferred_element_type=jnp.float32)              # (E, H)

    p = jnp.exp(logit - edge_max)                                       # (E, H)

    # broadcast p over the channels of each head
    if H == 1:
        p_b = p                                                         # lane-broadcast
    else:
        p_b = jnp.dot(p, expm, preferred_element_type=jnp.float32)      # (E, HC)
    wmsg = xl_src * p_b                                                 # (E, HC)
    # attention dropout (p=0.6) is identity in eval mode.

    # single fused scatter-add of [weighted messages | softmax denominators]
    cat = jnp.concatenate([wmsg, p], axis=1)                            # (E, HC+H)
    agg = jnp.dot(dst_oh_t, cat, preferred_element_type=jnp.float32)    # (N, HC+H)
    num = agg[:, :HC]                                                   # (N, HC)
    den = agg[:, HC:]                                                   # (N, H)
    if H == 1:
        den_b = den
    else:
        den_b = jnp.dot(den, expm, preferred_element_type=jnp.float32)  # (N, HC)
    out = num / den_b                                                   # node-level softmax norm

    if not concat:
        if H > 1:
            acc = out[:, 0:C]
            for h in range(1, H):
                acc = acc + out[:, h * C:(h + 1) * C]
            out = acc * (1.0 / H)                                       # mean over heads
        # H == 1: out is already (N, C)

    out = out + bias
    if apply_elu:
        out = jnp.where(out > 0, out, jnp.exp(out) - 1.0)               # ELU(alpha=1)
    return out


# ----------------------------------------------------------------------------
# Fused Pallas kernel: conv1 + ELU + conv2 in one call, selectors reused.
# ----------------------------------------------------------------------------
def make_encoder_kernel(H1, C1, emb, in_dim1):
    gf1 = in_dim1 < H1 * C1      # layer 1: gather raw features first (cheaper)
    gf2 = (H1 * C1) < emb        # layer 2: usually transform-then-gather

    def kernel(x_ref, ea_ref, src_oh_ref, dst_oh_ref, dst_oh_t_ref,
               wl1_ref, bl1_ref, wr1_ref, br1_ref, we1_ref, attm1_ref, expm1_ref, bias1_ref,
               wl2_ref, bl2_ref, wr2_ref, br2_ref, we2_ref, attm2_ref, bias2_ref,
               out_ref):
        # selectors stored bf16 (exact 0/1) -> cast once, reuse for both layers
        src_oh = src_oh_ref[...].astype(jnp.float32)        # (E, N)
        dst_oh = dst_oh_ref[...].astype(jnp.float32)        # (E, N)
        dst_oh_t = dst_oh_t_ref[...].astype(jnp.float32)    # (N, E) pre-transposed
        # shared additive segment mask: 0 where edge targets node, else -1e30
        neg_mask = (1.0 - dst_oh) * MASK_NEG                # (E, N)

        ea = ea_ref[...]
        ea1 = jnp.dot(ea, we1_ref[...], preferred_element_type=jnp.float32)  # (E, H1*C1)
        ea2 = jnp.dot(ea, we2_ref[...], preferred_element_type=jnp.float32)  # (E, emb)

        x = x_ref[...]
        # F.dropout(p=0.6) -> identity in eval mode
        h = _gatv2_dense(x, ea1, src_oh, dst_oh, dst_oh_t, neg_mask,
                         wl1_ref[...], bl1_ref[...], wr1_ref[...], br1_ref[...],
                         attm1_ref[...], expm1_ref[...], bias1_ref[...],
                         H=H1, C=C1, concat=True, apply_elu=True,
                         gather_first=gf1)                                    # (N, 64)
        # F.dropout -> identity in eval mode
        out = _gatv2_dense(h, ea2, src_oh, dst_oh, dst_oh_t, neg_mask,
                           wl2_ref[...], bl2_ref[...], wr2_ref[...], br2_ref[...],
                           attm2_ref[...], None, bias2_ref[...],
                           H=1, C=emb, concat=False, apply_elu=False,
                           gather_first=gf2)                                  # (N, emb)
        out_ref[...] = out.astype(out_ref.dtype)

    return kernel


def gat_encoder_forward(x, edge_index, edge_attr, p1, p2, emb):
    N = x.shape[0]
    src, dst = edge_index[0], edge_index[1]
    src, dst, edge_attr = add_self_loops_mean(src, dst, edge_attr, N)

    # One-hot selectors built ONCE outside the kernel and shared by both fused
    # layers; stored bf16 (0/1 exact) to halve their HBM/VMEM footprint.
    # The scatter selector is passed pre-transposed (N, E).
    # TODO(synk): for production-size N/E replace this O(E*N) dense-selector
    # strategy with an edge-tiled grid (online softmax accumulator, parallel
    # node axis for v7x's 2 TCs) + scalar-prefetched src/dst row gathers.
    src_oh = jax.nn.one_hot(src, N, dtype=jnp.bfloat16)      # (E, N)
    dst_oh = jax.nn.one_hot(dst, N, dtype=jnp.bfloat16)      # (E, N)
    dst_oh_t = dst_oh.T                                      # (N, E)

    kernel = make_encoder_kernel(8, 8, emb, p1["wl"].shape[0])
    vmem = pl.BlockSpec(memory_space=pltpu.MemorySpace.VMEM)
    fn = pl.pallas_call(
        kernel,
        out_shape=jax.ShapeDtypeStruct((N, emb), jnp.float32),
        in_specs=[vmem] * 20,
        out_specs=vmem,
        compiler_params=pltpu.CompilerParams(vmem_limit_bytes=32 * 1024 * 1024),
    )
    return fn(x.astype(jnp.float32), edge_attr.astype(jnp.float32),
              src_oh, dst_oh, dst_oh_t,
              p1["wl"], p1["bl"], p1["wr"], p1["br"], p1["we"],
              p1["attm"], p1["expm"], p1["bias"],
              p2["wl"], p2["bl"], p2["wr"], p2["br"], p2["we"],
              p2["attm"], p2["bias"])


# ----------------------------------------------------------------------------
# Plain-JAX glue: self-loop augmentation (add_self_loops, fill_value='mean')
# and parameter initialization.
# ----------------------------------------------------------------------------
def add_self_loops_mean(src, dst, edge_attr, num_nodes):
    # TODO(synk): assumes the input graph has no pre-existing self loops
    # (PyG would remove then re-add them; dynamic-shape removal is not done here).
    ones = jnp.ones_like(dst, dtype=jnp.float32)
    deg = jax.ops.segment_sum(ones, dst, num_segments=num_nodes)             # (N,)
    summ = jax.ops.segment_sum(edge_attr, dst, num_segments=num_nodes)       # (N, Fe)
    loop_attr = summ / jnp.maximum(deg, 1.0)[:, None]                        # mean over in-edges
    loops = jnp.arange(num_nodes, dtype=src.dtype)
    src2 = jnp.concatenate([src, loops])
    dst2 = jnp.concatenate([dst, loops])
    ea2 = jnp.concatenate([edge_attr, loop_attr], axis=0)
    return src2, dst2, ea2


def _glorot(key, shape):
    fan_in, fan_out = shape[0], shape[-1]
    limit = (6.0 / (fan_in + fan_out)) ** 0.5
    return jax.random.uniform(key, shape, jnp.float32, -limit, limit)


def init_gatv2_params(key, in_dim, out_c, heads, edge_dim, concat):
    k = jax.random.split(key, 4)
    hc = heads * out_c
    out_dim = hc if concat else out_c
    att = _glorot(k[3], (heads, out_c))
    # block-diagonal (HC, H): logits for all heads become a single matmul
    attm = (att[:, :, None] *
            jnp.eye(heads, dtype=jnp.float32)[:, None, :]).reshape(hc, heads)
    # head -> channels expansion matrix (H, HC): expm[h, h*C + c] = 1
    expm = jnp.kron(jnp.eye(heads, dtype=jnp.float32),
                    jnp.ones((1, out_c), jnp.float32))
    return {
        "wl": _glorot(k[0], (in_dim, hc)),
        "bl": jnp.zeros((1, hc), jnp.float32),
        "wr": _glorot(k[1], (in_dim, hc)),
        "br": jnp.zeros((1, hc), jnp.float32),
        "we": _glorot(k[2], (edge_dim, hc)),
        "attm": attm,
        "expm": expm,
        "bias": jnp.zeros((1, out_dim), jnp.float32),
    }


class GATEncoderPallas:
    """Pallas implementation of GATEncoder (eval mode: dropouts are identity)."""

    def __init__(self, node_feature_dim, edge_feature_dim, embedding_dim, key):
        k1, k2 = jax.random.split(key)
        self.p1 = init_gatv2_params(k1, node_feature_dim, 8, 8, edge_feature_dim, True)
        self.p2 = init_gatv2_params(k2, 8 * 8, embedding_dim, 1, edge_feature_dim, False)
        self.embedding_dim = embedding_dim

    def __call__(self, x, edge_index, edge_attr):
        return gat_encoder_forward(x, edge_index, edge_attr,
                                   self.p1, self.p2, self.embedding_dim)


if __name__ == "__main__":
    key = jax.random.PRNGKey(0)
    N, E = 16, 32
    node_feature_dim, edge_feature_dim, embedding_dim = 4, 4, 16

    k1, k2, k3, k4 = jax.random.split(key, 4)
    x = jax.random.normal(k1, (N, node_feature_dim), jnp.float32)
    src = jax.random.randint(k2, (E,), 0, N, dtype=jnp.int32)
    dst = jax.random.randint(k3, (E,), 0, N, dtype=jnp.int32)
    dst = jnp.where(dst == src, (dst + 1) % N, dst)   # keep example free of self loops
    edge_index = jnp.stack([src, dst])                # (2, E): row 0 = source, row 1 = target
    edge_attr = jax.random.normal(k4, (E, edge_feature_dim), jnp.float32)

    encoder = GATEncoderPallas(node_feature_dim, edge_feature_dim, embedding_dim,
                               jax.random.PRNGKey(42))
    out = encoder(x, edge_index, edge_attr)
    jax.block_until_ready(out)
    assert out.shape == (N, embedding_dim) and out.dtype == jnp.float32
    assert bool(jnp.all(jnp.isfinite(out)))
    print("KERNEL_OK")
</pallas_src>

<mosaic_0001>
module attributes {stable_mosaic.version = 11 : i64} {
  func.func @kernel(%arg0: memref<16x4xf32, #tpu.memory_space<vmem>>, %arg1: memref<48x4xf32, #tpu.memory_space<vmem>>, %arg2: memref<48x16xbf16, #tpu.memory_space<vmem>>, %arg3: memref<48x16xbf16, #tpu.memory_space<vmem>>, %arg4: memref<16x48xbf16, #tpu.memory_space<vmem>>, %arg5: memref<4x64xf32, #tpu.memory_space<vmem>>, %arg6: memref<1x64xf32, #tpu.memory_space<vmem>>, %arg7: memref<4x64xf32, #tpu.memory_space<vmem>>, %arg8: memref<1x64xf32, #tpu.memory_space<vmem>>, %arg9: memref<4x64xf32, #tpu.memory_space<vmem>>, %arg10: memref<64x8xf32, #tpu.memory_space<vmem>>, %arg11: memref<8x64xf32, #tpu.memory_space<vmem>>, %arg12: memref<1x64xf32, #tpu.memory_space<vmem>>, %arg13: memref<64x16xf32, #tpu.memory_space<vmem>>, %arg14: memref<1x16xf32, #tpu.memory_space<vmem>>, %arg15: memref<64x16xf32, #tpu.memory_space<vmem>>, %arg16: memref<1x16xf32, #tpu.memory_space<vmem>>, %arg17: memref<4x16xf32, #tpu.memory_space<vmem>>, %arg18: memref<16x1xf32, #tpu.memory_space<vmem>>, %arg19: memref<1x16xf32, #tpu.memory_space<vmem>>, %arg20: memref<16x16xf32, #tpu.memory_space<vmem>>) attributes {dimension_semantics = [], scalar_prefetch = 0 : i64, scratch_operands = 0 : i64, tpu.core_type = #tpu.core_type<tc>} {
    %c0 = arith.constant 0 : index
    %c0_0 = arith.constant 0 : index
    %0 = vector.load %arg2[%c0, %c0_0] : memref<48x16xbf16, #tpu.memory_space<vmem>>, vector<48x16xbf16>
    %1 = arith.extf %0 : vector<48x16xbf16> to vector<48x16xf32>
    %c0_1 = arith.constant 0 : index
    %c0_2 = arith.constant 0 : index
    %2 = vector.load %arg3[%c0_1, %c0_2] : memref<48x16xbf16, #tpu.memory_space<vmem>>, vector<48x16xbf16>
    %3 = arith.extf %2 : vector<48x16xbf16> to vector<48x16xf32>
    %c0_3 = arith.constant 0 : index
    %c0_4 = arith.constant 0 : index
    %4 = vector.load %arg4[%c0_3, %c0_4] : memref<16x48xbf16, #tpu.memory_space<vmem>>, vector<16x48xbf16>
    %5 = arith.extf %4 : vector<16x48xbf16> to vector<16x48xf32>
    %cst = arith.constant 1.000000e+00 : f32
    %6 = vector.broadcast %cst : f32 to vector<48x16xf32>
    %7 = arith.subf %6, %3 : vector<48x16xf32>
    %cst_5 = arith.constant -1.000000e+30 : f32
    %8 = vector.broadcast %cst_5 : f32 to vector<48x16xf32>
    %9 = arith.mulf %7, %8 : vector<48x16xf32>
    %c0_6 = arith.constant 0 : index
    %c0_7 = arith.constant 0 : index
    %10 = vector.load %arg1[%c0_6, %c0_7] : memref<48x4xf32, #tpu.memory_space<vmem>>, vector<48x4xf32>
    %c0_8 = arith.constant 0 : index
    %c0_9 = arith.constant 0 : index
    %11 = vector.load %arg9[%c0_8, %c0_9] : memref<4x64xf32, #tpu.memory_space<vmem>>, vector<4x64xf32>
    %cst_10 = arith.constant dense<0.000000e+00> : vector<48x64xf32>
    %12 = tpu.matmul %10, %11, %cst_10 {dimension_numbers = #tpu.dot_dimension_numbers<[1], [0], [0], [1], [0, 0, 1, 1], [], []>} : vector<48x4xf32>, vector<4x64xf32>, vector<48x64xf32> -> vector<48x64xf32>
    %c0_11 = arith.constant 0 : index
    %c0_12 = arith.constant 0 : index
    %13 = vector.load %arg17[%c0_11, %c0_12] : memref<4x16xf32, #tpu.memory_space<vmem>>, vector<4x16xf32>
    %cst_13 = arith.constant dense<0.000000e+00> : vector<48x16xf32>
    %14 = tpu.matmul %10, %13, %cst_13 {dimension_numbers = #tpu.dot_dimension_numbers<[1], [0], [0], [1], [0, 0, 1, 1], [], []>} : vector<48x4xf32>, vector<4x16xf32>, vector<48x16xf32> -> vector<48x16xf32>
    %c0_14 = arith.constant 0 : index
    %c0_15 = arith.constant 0 : index
    %15 = vector.load %arg0[%c0_14, %c0_15] : memref<16x4xf32, #tpu.memory_space<vmem>>, vector<16x4xf32>
    %c0_16 = arith.constant 0 : index
    %c0_17 = arith.constant 0 : index
    %16 = vector.load %arg5[%c0_16, %c0_17] : memref<4x64xf32, #tpu.memory_space<vmem>>, vector<4x64xf32>
    %c0_18 = arith.constant 0 : index
    %c0_19 = arith.constant 0 : index
    %17 = vector.load %arg6[%c0_18, %c0_19] : memref<1x64xf32, #tpu.memory_space<vmem>>, vector<1x64xf32>
    %c0_20 = arith.constant 0 : index
    %c0_21 = arith.constant 0 : index
    %18 = vector.load %arg7[%c0_20, %c0_21] : memref<4x64xf32, #tpu.memory_space<vmem>>, vector<4x64xf32>
    %c0_22 = arith.constant 0 : index
    %c0_23 = arith.constant 0 : index
    %19 = vector.load %arg8[%c0_22, %c0_23] : memref<1x64xf32, #tpu.memory_space<vmem>>, vector<1x64xf32>
    %c0_24 = arith.constant 0 : index
    %c0_25 = arith.constant 0 : index
    %20 = vector.load %arg10[%c0_24, %c0_25] : memref<64x8xf32, #tpu.memory_space<vmem>>, vector<64x8xf32>
    %c0_26 = arith.constant 0 : index
    %c0_27 = arith.constant 0 : index
    %21 = vector.load %arg11[%c0_26, %c0_27] : memref<8x64xf32, #tpu.memory_space<vmem>>, vector<8x64xf32>
    %c0_28 = arith.constant 0 : index
    %c0_29 = arith.constant 0 : index
    %22 = vector.load %arg12[%c0_28, %c0_29] : memref<1x64xf32, #tpu.memory_space<vmem>>, vector<1x64xf32>
    %cst_30 = arith.constant dense<0.000000e+00> : vector<48x4xf32>
    %23 = tpu.matmul %1, %15, %cst_30 {dimension_numbers = #tpu.dot_dimension_numbers<[1], [0], [0], [1], [0, 0, 1, 1], [], []>} : vector<48x16xf32>, vector<16x4xf32>, vector<48x4xf32> -> vector<48x4xf32>
    %cst_31 = arith.constant dense<0.000000e+00> : vector<48x4xf32>
    %24 = tpu.matmul %3, %15, %cst_31 {dimension_numbers = #tpu.dot_dimension_numbers<[1], [0], [0], [1], [0, 0, 1, 1], [], []>} : vector<48x16xf32>, vector<16x4xf32>, vector<48x4xf32> -> vector<48x4xf32>
    %cst_32 = arith.constant dense<0.000000e+00> : vector<48x64xf32>
    %25 = tpu.matmul %23, %16, %cst_32 {dimension_numbers = #tpu.dot_dimension_numbers<[1], [0], [0], [1], [0, 0, 1, 1], [], []>} : vector<48x4xf32>, vector<4x64xf32>, vector<48x64xf32> -> vector<48x64xf32>
    %26 = vector.broadcast %17 : vector<1x64xf32> to vector<48x64xf32>
    %27 = arith.addf %25, %26 : vector<48x64xf32>
    %cst_33 = arith.constant dense<0.000000e+00> : vector<48x64xf32>
    %28 = tpu.matmul %24, %18, %cst_33 {dimension_numbers = #tpu.dot_dimension_numbers<[1], [0], [0], [1], [0, 0, 1, 1], [], []>} : vector<48x4xf32>, vector<4x64xf32>, vector<48x64xf32> -> vector<48x64xf32>
    %29 = vector.broadcast %19 : vector<1x64xf32> to vector<48x64xf32>
    %30 = arith.addf %28, %29 : vector<48x64xf32>
    %31 = arith.addf %27, %30 : vector<48x64xf32>
    %32 = arith.addf %31, %12 : vector<48x64xf32>
    %cst_34 = arith.constant 0.000000e+00 : f32
    %33 = vector.broadcast %cst_34 : f32 to vector<48x64xf32>
    %34 = arith.cmpf ogt, %32, %33 : vector<48x64xf32>
    %cst_35 = arith.constant 2.000000e-01 : f32
    %35 = vector.broadcast %cst_35 : f32 to vector<48x64xf32>
    %36 = arith.mulf %35, %32 : vector<48x64xf32>
    %37 = arith.select %34, %32, %36 : vector<48x64xi1>, vector<48x64xf32>
    %cst_36 = arith.constant dense<0.000000e+00> : vector<48x8xf32>
    %38 = tpu.matmul %37, %20, %cst_36 {dimension_numbers = #tpu.dot_dimension_numbers<[1], [0], [0], [1], [0, 0, 1, 1], [], []>} : vector<48x64xf32>, vector<64x8xf32>, vector<48x8xf32> -> vector<48x8xf32>
    %39 = vector.extract_strided_slice %38 {offsets = [0, 0], sizes = [48, 1], strides = [1, 1]} : vector<48x8xf32> to vector<48x1xf32>
    %40 = vector.broadcast %39 : vector<48x1xf32> to vector<48x16xf32>
    %41 = arith.addf %9, %40 : vector<48x16xf32>
    %cst_37 = arith.constant dense<0xFF800000> : vector<16xf32>
    %42 = vector.multi_reduction <maximumf>, %41, %cst_37 [0] : vector<48x16xf32> to vector<16xf32>
    %43 = vector.shape_cast %42 : vector<16xf32> to vector<1x16xf32>
    %44 = vector.extract_strided_slice %38 {offsets = [0, 1], sizes = [48, 1], strides = [1, 1]} : vector<48x8xf32> to vector<48x1xf32>
    %45 = vector.broadcast %44 : vector<48x1xf32> to vector<48x16xf32>
    %46 = arith.addf %9, %45 : vector<48x16xf32>
    %cst_38 = arith.constant dense<0xFF800000> : vector<16xf32>
    %47 = vector.multi_reduction <maximumf>, %46, %cst_38 [0] : vector<48x16xf32> to vector<16xf32>
    %48 = vector.shape_cast %47 : vector<16xf32> to vector<1x16xf32>
    %49 = vector.extract_strided_slice %38 {offsets = [0, 2], sizes = [48, 1], strides = [1, 1]} : vector<48x8xf32> to vector<48x1xf32>
    %50 = vector.broadcast %49 : vector<48x1xf32> to vector<48x16xf32>
    %51 = arith.addf %9, %50 : vector<48x16xf32>
    %cst_39 = arith.constant dense<0xFF800000> : vector<16xf32>
    %52 = vector.multi_reduction <maximumf>, %51, %cst_39 [0] : vector<48x16xf32> to vector<16xf32>
    %53 = vector.shape_cast %52 : vector<16xf32> to vector<1x16xf32>
    %54 = vector.extract_strided_slice %38 {offsets = [0, 3], sizes = [48, 1], strides = [1, 1]} : vector<48x8xf32> to vector<48x1xf32>
    %55 = vector.broadcast %54 : vector<48x1xf32> to vector<48x16xf32>
    %56 = arith.addf %9, %55 : vector<48x16xf32>
    %cst_40 = arith.constant dense<0xFF800000> : vector<16xf32>
    %57 = vector.multi_reduction <maximumf>, %56, %cst_40 [0] : vector<48x16xf32> to vector<16xf32>
    %58 = vector.shape_cast %57 : vector<16xf32> to vector<1x16xf32>
    %59 = vector.extract_strided_slice %38 {offsets = [0, 4], sizes = [48, 1], strides = [1, 1]} : vector<48x8xf32> to vector<48x1xf32>
    %60 = vector.broadcast %59 : vector<48x1xf32> to vector<48x16xf32>
    %61 = arith.addf %9, %60 : vector<48x16xf32>
    %cst_41 = arith.constant dense<0xFF800000> : vector<16xf32>
    %62 = vector.multi_reduction <maximumf>, %61, %cst_41 [0] : vector<48x16xf32> to vector<16xf32>
    %63 = vector.shape_cast %62 : vector<16xf32> to vector<1x16xf32>
    %64 = vector.extract_strided_slice %38 {offsets = [0, 5], sizes = [48, 1], strides = [1, 1]} : vector<48x8xf32> to vector<48x1xf32>
    %65 = vector.broadcast %64 : vector<48x1xf32> to vector<48x16xf32>
    %66 = arith.addf %9, %65 : vector<48x16xf32>
    %cst_42 = arith.constant dense<0xFF800000> : vector<16xf32>
    %67 = vector.multi_reduction <maximumf>, %66, %cst_42 [0] : vector<48x16xf32> to vector<16xf32>
    %68 = vector.shape_cast %67 : vector<16xf32> to vector<1x16xf32>
    %69 = vector.extract_strided_slice %38 {offsets = [0, 6], sizes = [48, 1], strides = [1, 1]} : vector<48x8xf32> to vector<48x1xf32>
    %70 = vector.broadcast %69 : vector<48x1xf32> to vector<48x16xf32>
    %71 = arith.addf %9, %70 : vector<48x16xf32>
    %cst_43 = arith.constant dense<0xFF800000> : vector<16xf32>
    %72 = vector.multi_reduction <maximumf>, %71, %cst_43 [0] : vector<48x16xf32> to vector<16xf32>
    %73 = vector.shape_cast %72 : vector<16xf32> to vector<1x16xf32>
    %74 = vector.extract_strided_slice %38 {offsets = [0, 7], sizes = [48, 1], strides = [1, 1]} : vector<48x8xf32> to vector<48x1xf32>
    %75 = vector.broadcast %74 : vector<48x1xf32> to vector<48x16xf32>
    %76 = arith.addf %9, %75 : vector<48x16xf32>
    %cst_44 = arith.constant dense<0xFF800000> : vector<16xf32>
    %77 = vector.multi_reduction <maximumf>, %76, %cst_44 [0] : vector<48x16xf32> to vector<16xf32>
    %78 = vector.shape_cast %77 : vector<16xf32> to vector<1x16xf32>
    %79 = tpu.concatenate %43, %48, %53, %58, %63, %68, %73, %78 in 0 : vector<1x16xf32>, vector<1x16xf32>, vector<1x16xf32>, vector<1x16xf32>, vector<1x16xf32>, vector<1x16xf32>, vector<1x16xf32>, vector<1x16xf32> -> vector<8x16xf32>
    %80 = tpu.transpose %79, [1, 0] : vector<8x16xf32> -> vector<16x8xf32>
    %cst_45 = arith.constant dense<0.000000e+00> : vector<48x8xf32>
    %81 = tpu.matmul %3, %80, %cst_45 {dimension_numbers = #tpu.dot_dimension_numbers<[1], [0], [0], [1], [0, 0, 1, 1], [], []>} : vector<48x16xf32>, vector<16x8xf32>, vector<48x8xf32> -> vector<48x8xf32>
    %82 = arith.subf %38, %81 : vector<48x8xf32>
    %83 = math.exp %82 : vector<48x8xf32>
    %cst_46 = arith.constant dense<0.000000e+00> : vector<48x64xf32>
    %84 = tpu.matmul %83, %21, %cst_46 {dimension_numbers = #tpu.dot_dimension_numbers<[1], [0], [0], [1], [0, 0, 1, 1], [], []>} : vector<48x8xf32>, vector<8x64xf32>, vector<48x64xf32> -> vector<48x64xf32>
    %85 = arith.mulf %27, %84 : vector<48x64xf32>
    %86 = tpu.concatenate %85, %83 in 1 : vector<48x64xf32>, vector<48x8xf32> -> vector<48x72xf32>
    %cst_47 = arith.constant dense<0.000000e+00> : vector<16x72xf32>
    %87 = tpu.matmul %5, %86, %cst_47 {dimension_numbers = #tpu.dot_dimension_numbers<[1], [0], [0], [1], [0, 0, 1, 1], [], []>} : vector<16x48xf32>, vector<48x72xf32>, vector<16x72xf32> -> vector<16x72xf32>
    %88 = vector.extract_strided_slice %87 {offsets = [0, 0], sizes = [16, 64], strides = [1, 1]} : vector<16x72xf32> to vector<16x64xf32>
    %89 = vector.extract_strided_slice %87 {offsets = [0, 64], sizes = [16, 8], strides = [1, 1]} : vector<16x72xf32> to vector<16x8xf32>
    %cst_48 = arith.constant dense<0.000000e+00> : vector<16x64xf32>
    %90 = tpu.matmul %89, %21, %cst_48 {dimension_numbers = #tpu.dot_dimension_numbers<[1], [0], [0], [1], [0, 0, 1, 1], [], []>} : vector<16x8xf32>, vector<8x64xf32>, vector<16x64xf32> -> vector<16x64xf32>
    %91 = arith.divf %88, %90 : vector<16x64xf32>
    %92 = vector.broadcast %22 : vector<1x64xf32> to vector<16x64xf32>
    %93 = arith.addf %91, %92 : vector<16x64xf32>
    %cst_49 = arith.constant 0.000000e+00 : f32
    %94 = vector.broadcast %cst_49 : f32 to vector<16x64xf32>
    %95 = arith.cmpf ogt, %93, %94 : vector<16x64xf32>
    %96 = math.exp %93 : vector<16x64xf32>
    %cst_50 = arith.constant 1.000000e+00 : f32
    %97 = vector.broadcast %cst_50 : f32 to vector<16x64xf32>
    %98 = arith.subf %96, %97 : vector<16x64xf32>
    %99 = arith.select %95, %93, %98 : vector<16x64xi1>, vector<16x64xf32>
    %c0_51 = arith.constant 0 : index
    %c0_52 = arith.constant 0 : index
    %100 = vector.load %arg13[%c0_51, %c0_52] : memref<64x16xf32, #tpu.memory_space<vmem>>, vector<64x16xf32>
    %c0_53 = arith.constant 0 : index
    %c0_54 = arith.constant 0 : index
    %101 = vector.load %arg14[%c0_53, %c0_54] : memref<1x16xf32, #tpu.memory_space<vmem>>, vector<1x16xf32>
    %c0_55 = arith.constant 0 : index
    %c0_56 = arith.constant 0 : index
    %102 = vector.load %arg15[%c0_55, %c0_56] : memref<64x16xf32, #tpu.memory_space<vmem>>, vector<64x16xf32>
    %c0_57 = arith.constant 0 : index
    %c0_58 = arith.constant 0 : index
    %103 = vector.load %arg16[%c0_57, %c0_58] : memref<1x16xf32, #tpu.memory_space<vmem>>, vector<1x16xf32>
    %c0_59 = arith.constant 0 : index
    %c0_60 = arith.constant 0 : index
    %104 = vector.load %arg18[%c0_59, %c0_60] : memref<16x1xf32, #tpu.memory_space<vmem>>, vector<16x1xf32>
    %c0_61 = arith.constant 0 : index
    %c0_62 = arith.constant 0 : index
    %105 = vector.load %arg19[%c0_61, %c0_62] : memref<1x16xf32, #tpu.memory_space<vmem>>, vector<1x16xf32>
    %cst_63 = arith.constant dense<0.000000e+00> : vector<16x16xf32>
    %106 = tpu.matmul %99, %100, %cst_63 {dimension_numbers = #tpu.dot_dimension_numbers<[1], [0], [0], [1], [0, 0, 1, 1], [], []>} : vector<16x64xf32>, vector<64x16xf32>, vector<16x16xf32> -> vector<16x16xf32>
    %107 = vector.broadcast %101 : vector<1x16xf32> to vector<16x16xf32>
    %108 = arith.addf %106, %107 : vector<16x16xf32>
    %cst_64 = arith.constant dense<0.000000e+00> : vector<16x16xf32>
    %109 = tpu.matmul %99, %102, %cst_64 {dimension_numbers = #tpu.dot_dimension_numbers<[1], [0], [0], [1], [0, 0, 1, 1], [], []>} : vector<16x64xf32>, vector<64x16xf32>, vector<16x16xf32> -> vector<16x16xf32>
    %110 = vector.broadcast %103 : vector<1x16xf32> to vector<16x16xf32>
    %111 = arith.addf %109, %110 : vector<16x16xf32>
    %cst_65 = arith.constant dense<0.000000e+00> : vector<48x16xf32>
    %112 = tpu.matmul %1, %108, %cst_65 {dimension_numbers = #tpu.dot_dimension_numbers<[1], [0], [0], [1], [0, 0, 1, 1], [], []>} : vector<48x16xf32>, vector<16x16xf32>, vector<48x16xf32> -> vector<48x16xf32>
    %cst_66 = arith.constant dense<0.000000e+00> : vector<48x16xf32>
    %113 = tpu.matmul %3, %111, %cst_66 {dimension_numbers = #tpu.dot_dimension_numbers<[1], [0], [0], [1], [0, 0, 1, 1], [], []>} : vector<48x16xf32>, vector<16x16xf32>, vector<48x16xf32> -> vector<48x16xf32>
    %114 = arith.addf %112, %113 : vector<48x16xf32>
    %115 = arith.addf %114, %14 : vector<48x16xf32>
    %cst_67 = arith.constant 0.000000e+00 : f32
    %116 = vector.broadcast %cst_67 : f32 to vector<48x16xf32>
    %117 = arith.cmpf ogt, %115, %116 : vector<48x16xf32>
    %cst_68 = arith.constant 2.000000e-01 : f32
    %118 = vector.broadcast %cst_68 : f32 to vector<48x16xf32>
    %119 = arith.mulf %118, %115 : vector<48x16xf32>
    %120 = arith.select %117, %115, %119 : vector<48x16xi1>, vector<48x16xf32>
    %cst_69 = arith.constant dense<0.000000e+00> : vector<48x1xf32>
    %121 = tpu.matmul %120, %104, %cst_69 {dimension_numbers = #tpu.dot_dimension_numbers<[1], [0], [0], [1], [0, 0, 1, 1], [], []>} : vector<48x16xf32>, vector<16x1xf32>, vector<48x1xf32> -> vector<48x1xf32>
    %122 = vector.broadcast %121 : vector<48x1xf32> to vector<48x16xf32>
    %123 = arith.addf %9, %122 : vector<48x16xf32>
    %cst_70 = arith.constant dense<0xFF800000> : vector<16xf32>
    %124 = vector.multi_reduction <maximumf>, %123, %cst_70 [0] : vector<48x16xf32> to vector<16xf32>
    %125 = vector.shape_cast %124 : vector<16xf32> to vector<1x16xf32>
    %126 = tpu.transpose %125, [1, 0] : vector<1x16xf32> -> vector<16x1xf32>
    %cst_71 = arith.constant dense<0.000000e+00> : vector<48x1xf32>
    %127 = tpu.matmul %3, %126, %cst_71 {dimension_numbers = #tpu.dot_dimension_numbers<[1], [0], [0], [1], [0, 0, 1, 1], [], []>} : vector<48x16xf32>, vector<16x1xf32>, vector<48x1xf32> -> vector<48x1xf32>
    %128 = arith.subf %121, %127 : vector<48x1xf32>
    %129 = math.exp %128 : vector<48x1xf32>
    %130 = vector.broadcast %129 : vector<48x1xf32> to vector<48x16xf32>
    %131 = arith.mulf %112, %130 : vector<48x16xf32>
    %132 = tpu.concatenate %131, %129 in 1 : vector<48x16xf32>, vector<48x1xf32> -> vector<48x17xf32>
    %cst_72 = arith.constant dense<0.000000e+00> : vector<16x17xf32>
    %133 = tpu.matmul %5, %132, %cst_72 {dimension_numbers = #tpu.dot_dimension_numbers<[1], [0], [0], [1], [0, 0, 1, 1], [], []>} : vector<16x48xf32>, vector<48x17xf32>, vector<16x17xf32> -> vector<16x17xf32>
    %134 = vector.extract_strided_slice %133 {offsets = [0, 0], sizes = [16, 16], strides = [1, 1]} : vector<16x17xf32> to vector<16x16xf32>
    %135 = vector.extract_strided_slice %133 {offsets = [0, 16], sizes = [16, 1], strides = [1, 1]} : vector<16x17xf32> to vector<16x1xf32>
    %136 = vector.broadcast %135 : vector<16x1xf32> to vector<16x16xf32>
    %137 = arith.divf %134, %136 : vector<16x16xf32>
    %138 = vector.broadcast %105 : vector<1x16xf32> to vector<16x16xf32>
    %139 = arith.addf %137, %138 : vector<16x16xf32>
    %c0_73 = arith.constant 0 : index
    %c0_74 = arith.constant 0 : index
    %140 = vector.load %arg20[%c0_73, %c0_74] : memref<16x16xf32, #tpu.memory_space<vmem>>, vector<16x16xf32>
    tpu.vector_store %arg20[%c0_73, %c0_74], %139 {strides = array<i32>} : memref<16x16xf32, #tpu.memory_space<vmem>>, vector<16x16xf32>,
    return
  }
}

</mosaic_0001>

<bundles_post_ra>
// kernel: tpu_custom_call.1
= control target key start
LH: loop header
LB: loop body
LE: loop exit
PB: predicated region body
PF: predicated region fallthrough
CT: control target
= control target key end

     0   :  { %s2841_s0 = inlined_call_operand.vmem [shape: f32[16,4], index: 0, kind: input, shape index: {}]   ;;  %s2842_s1 = inlined_call_operand.vmem [shape: f32[48,4], index: 1, kind: input, shape index: {}]   ;;  %s2843_s2 = inlined_call_operand.vmem [shape: bf16[48,16], index: 2, kind: input, shape index: {}]   ;;  %s2844_s3 = inlined_call_operand.vmem [shape: bf16[48,16], index: 3, kind: input, shape index: {}]   ;;  %s2845_s4 = inlined_call_operand.vmem [shape: bf16[16,48], index: 4, kind: input, shape index: {}]   ;;  %s2846_s5 = inlined_call_operand.vmem [shape: f32[4,64], index: 5, kind: input, shape index: {}]   ;;  %s2847_s6 = inlined_call_operand.vmem [shape: f32[1,64], index: 6, kind: input, shape index: {}]   ;;  %s2848_s7 = inlined_call_operand.vmem [shape: f32[4,64], index: 7, kind: input, shape index: {}]   ;;  %s2849_s8 = inlined_call_operand.vmem [shape: f32[1,64], index: 8, kind: input, shape index: {}]   ;;  %s2850_s9 = inlined_call_operand.vmem [shape: f32[4,64], index: 9, kind: input, shape index: {}]   ;;  %s2851_s10 = inlined_call_operand.vmem [shape: f32[64,8], index: 10, kind: input, shape index: {}]   ;;  %s2852_s11 = inlined_call_operand.vmem [shape: f32[8,64], index: 11, kind: input, shape index: {}]   ;;  %s2853_s12 = inlined_call_operand.vmem [shape: f32[1,64], index: 12, kind: input, shape index: {}]   ;;  %s2854_s13 = inlined_call_operand.vmem [shape: f32[64,16], index: 13, kind: input, shape index: {}]   ;;  %s2855_s14 = inlined_call_operand.vmem [shape: f32[1,16], index: 14, kind: input, shape index: {}]   ;;  %s2856_s15 = inlined_call_operand.vmem [shape: f32[64,16], index: 15, kind: input, shape index: {}]   ;;  %s2857_s16 = inlined_call_operand.vmem [shape: f32[1,16], index: 16, kind: input, shape index: {}]   ;;  %s2858_s17 = inlined_call_operand.vmem [shape: f32[4,16], index: 17, kind: input, shape index: {}]   ;;  %s2859_s18 = inlined_call_operand.vmem [shape: f32[16,1], index: 18, kind: input, shape index: {}]   ;;  %s2860_s19 = inlined_call_operand.vmem [shape: f32[1,16], index: 19, kind: input, shape index: {}]   ;;  %s2861_s20 = inlined_call_operand.hbm [shape: f32[16,16], index: 20, kind: output, shape index: {}]  }
   0x1   :  { %2884 = sst [smem:[#allocation20_spill]] %s2841_s0 }
   0x2   :  { %2885 = sst [smem:[#allocation21_spill]] %s2842_s1 }
   0x3   :  { %2886 = sst [smem:[#allocation22_spill]] %s2843_s2 }
   0x4   :  { %2887 = sst [smem:[#allocation23_spill]] %s2844_s3 }
   0x5   :  { %2888 = sst [smem:[#allocation24_spill]] %s2845_s4 }
   0x6   :  { %s2889_s23 = sld [smem:[#allocation20_spill]]  ;;  %vm226_vm0 = vcmask 130048  }
   0x7   :  { %s2890_s26 = sld [smem:[#allocation22_spill]] }
   0x8   :  { %s2892_s4 = sld [smem:[#allocation23_spill]] }
   0xc   :  { %v211_v0 = vld [vmem:[%s2889_s23 + $0x8] sm:$0xff]  ;;  %v210_v1 = vld [vmem:[%s2889_s23] sm:$0xff] }
   0xd   :  { %v2068_v2 = vld [vmem:[%s2890_s26] sm:$0xff]   ;;  %259 = vmatpush.msra.mxu2 %v211_v0  ;;  %312 = vmatpush.msra.mxu3 %v211_v0 }
   0xe   :  { %2891 = vst [vmem:[#allocation5_spill] sm:$0xff] %v2068_v2  ;;  %v2871_v3 = vunpack.c.l.bf16 %v2068_v2  ;;  %v1755_v4 = vld [vmem:[%s2892_s4] sm:$0xff]  }
   0xf   :  { %v2074_v5 = vunpack.c.l.bf16 %v1755_v4  ;;  %260 = vmatpush.msra.mxu2 %v210_v1  ;;  %313 = vmatpush.msra.mxu3 %v210_v1 }
  0x10   :  { %1667 = vmatmul.msk.f32.vlgmr.msra.gmra.mxu2 %vm226_vm0, %v2871_v3 }
  0x11   :  { %1673 = vmatmul.msk.f32.vlgmr.msra.gmra.mxu3 %vm226_vm0, %v2074_v5 }
  0x12   :  { %25 = vsyncpa [#allocation3], 0  ;;  %v2870_v6 = vunpack.c.h.bf16 %v2068_v2  ;;  %v2082_v7 = vunpack.c.h.bf16 %v1755_v4  ;;  %v112_v8 = vld [vmem:[%s2850_s9] sm:$0xf]  ;;  %vm132_vm1 = vcmask 1043456   ;;  %s2893_s1 = sld [smem:[#allocation21_spill]] }
  0x13   :  { %vm113_vm2 = vcmask 31744   ;;  %v2098_v10 = vld [vmem:[%s2890_s26 + $0x8] sm:$0xff]   ;;  %1653 = vmatpush.msk.msra.mxu0 %vm132_vm1, %v112_v8  ;;  %v171_v12 = vld [vmem:[%s2858_s17] sm:$0xf]  ;;  %v2138_v19 = vld [vmem:[%s2890_s26 + $0x10] sm:$0xff]   ;;  %vm481_vm4 = vcmask 523264  }
  0x14   :  { %2894 = vst [vmem:[#allocation6_spill] sm:$0xff] %v2098_v10  ;;  %v1772_v11 = vld [vmem:[%s2892_s4 + $0x8] sm:$0xff]   ;;  %1774 = vmatpush.msk.msra.mxu1 %vm132_vm1, %v171_v12  ;;  %v2869_v14 = vunpack.c.l.bf16 %v2098_v10  ;;  %v2868_v17 = vunpack.c.h.bf16 %v2098_v10  ;;  %v1773_v20 = vld [vmem:[%s2892_s4 + $0x10] sm:$0xff]   ;;  %v2867_v22 = vunpack.c.l.bf16 %v2138_v19  ;;  %v2866_v25 = vunpack.c.h.bf16 %v2138_v19  ;;  %v212_v28 = vld [vmem:[%s2846_s5] sm:$0xf] }
  0x15   :  { %1660 = vmatpush.msk.msrb.mxu0 %vm132_vm1, %v171_v12  ;;  %v2115_v15 = vunpack.c.l.bf16 %v1772_v11  ;;  %v2128_v18 = vunpack.c.h.bf16 %v1772_v11  ;;  %2895 = vst [vmem:[#allocation7_spill] sm:$0xff] %v2138_v19  ;;  %v2149_v23 = vunpack.c.l.bf16 %v1773_v20  ;;  %v2162_v26 = vunpack.c.h.bf16 %v1773_v20  ;;  %v214_v29 = vld [vmem:[%s2848_s7] sm:$0xf]  ;;  %v223_v38 = vld [vmem:[%s2851_s10 + $0x38] sm:$0xff]  ;;  %v222_v39 = vld [vmem:[%s2851_s10 + $0x30] sm:$0xff]  ;;  %s1953_s7 = smov 8  }
  0x16   :  { %1686 = vmatpush.msk.msrb.mxu1 %vm132_vm1, %v214_v29  ;;  %508 = vmatpush.msrb.mxu2 %v223_v38  ;;  %v221_v40 = vld [vmem:[%s2851_s10 + $0x28] sm:$0xff]  ;;  %v220_v51 = vld [vmem:[%s2851_s10 + $0x20] sm:$0xff]  ;;  %v219_v54 = vld [vmem:[%s2851_s10 + $0x18] sm:$0xff]  ;;  %v1942_v38 = vmov 0   ;;  %vm917_vm10 = vcmask 1040384   ;;  %vm919_vm11 = vcmask 1041408  }
  0x17   :  { %v218_v55 = vld [vmem:[%s2851_s10 + $0x10] sm:$0xff]  ;;  %v217_v56 = vld [vmem:[%s2851_s10 + $0x8] sm:$0xff]  ;;  %v216_v57 = vld [vmem:[%s2851_s10] sm:$0xff]  ;;  %1789 = vset.pattern.permute.xlu0 %v1942_v38  ;;  %vm921_vm12 = vcmask 1042432   ;;  %vm924_vm13 = vcmask 1044480   ;;  %vm926_vm14 = vcmask 1045504  }
  0x18   :  { %1668 = vmatmul.msk.f32.gmra.mxu2 %vm226_vm0, %v2870_v6  ;;  %v106_v9 = vld [vmem:[%s2893_s1] sm:$0xff]  ;;  %v107_v13 = vld [vmem:[%s2893_s1 + $0x8] sm:$0xff]  ;;  %v108_v16 = vld [vmem:[%s2893_s1 + $0x10] sm:$0xff]  ;;  %vm928_vm15 = vcmask 1046528   ;;  %s1948_s10 = smov 64  }
  0x19   :  { %1674 = vmatmul.msk.f32.gmra.mxu3 %vm226_vm0, %v2082_v7  ;;  %1654 = vmatmul.msk.f32.vlgmr.msra.gmra.mxu0 %vm113_vm2, %v106_v9  ;;  %v109_v21 = vld [vmem:[%s2893_s1 + $0x18] sm:$0xff]  ;;  %v110_v24 = vld [vmem:[%s2893_s1 + $0x20] sm:$0xff]  ;;  %v111_v27 = vld [vmem:[%s2893_s1 + $0x28] sm:$0xff]  ;;  %s2913_s1 = sld [smem:[#allocation24_spill]] }
  0x1a   :  { %1662 = vmatmul.msk.f32.vlgmr.msra.gmra.mxu1 %vm113_vm2, %v107_v13  ;;  %1679 = vmatpush.msk.msra.mxu0 %vm132_vm1, %v212_v28  ;;  %v1872_v62 = vld [vmem:[%s2847_s6] ss:$0 sm:$0xff] }
  0x1b   :  { %509 = vmatpush.msrb.mxu2 %v222_v39  ;;  %v1873_v63 = vld [vmem:[%s2849_s8] ss:$0 sm:$0xff] }
  0x1d   :  { %510 = vmatpush.msrb.mxu2 %v221_v40 }
  0x1f   :  { %511 = vmatpush.msrb.mxu2 %v220_v51 }
  0x20   :  { %1669 = vmatmul.msk.f32.gmra.mxu2 %vm226_vm0, %v2869_v14  ;;  %v96_v14 = vsub.f32 1.0, %v2115_v15 }
  0x21   :  { %1675 = vmatmul.msk.f32.gmra.mxu3 %vm226_vm0, %v2115_v15  ;;  %1655 = vmatmul.msk.f32.gmra.mxu0 %vm113_vm2, %v107_v13 }
  0x22   :  { %1663 = vmatmul.msk.f32.gmra.mxu1 %vm113_vm2, %v108_v16  ;;  %512 = vmatpush.msrb.mxu2 %v219_v54 }
  0x24   :  { %513 = vmatpush.msrb.mxu2 %v218_v55 }
  0x26   :  { %514 = vmatpush.msrb.mxu2 %v217_v56 }
  0x28   :  { %1670 = vmatmul.msk.f32.gmra.mxu2 %vm226_vm0, %v2868_v17 }
  0x29   :  { %1676 = vmatmul.msk.f32.gmra.mxu3 %vm226_vm0, %v2128_v18  ;;  %1656 = vmatmul.msk.f32.gmra.mxu0 %vm113_vm2, %v108_v16 }
  0x2a   :  { %1664 = vmatmul.msk.f32.gmra.mxu1 %vm113_vm2, %v109_v21  ;;  %515 = vmatpush.msrb.mxu2 %v216_v57 }
  0x30   :  { %1671 = vmatmul.msk.f32.gmra.mxu2 %vm226_vm0, %v2867_v22  ;;  %v94_v22 = vsub.f32 1.0, %v2074_v5 }
  0x31   :  { %1677 = vmatmul.msk.f32.gmra.mxu3 %vm226_vm0, %v2149_v23  ;;  %1657 = vmatmul.msk.f32.gmra.mxu0 %vm113_vm2, %v109_v21 }
  0x32   :  { %1665 = vmatmul.msk.f32.gmra.mxu1 %vm113_vm2, %v110_v24 }
  0x38   :  { %1672 = vmatmul.msk.f32.gmra.mxu2 %vm226_vm0, %v2866_v25 }
  0x39   :  { %1678 = vmatmul.msk.f32.gmra.mxu3 %vm226_vm0, %v2162_v26  ;;  %1658 = vmatmul.msk.f32.gmra.mxu0 %vm113_vm2, %v110_v24 }
  0x3a   :  { %1666 = vmatmul.msk.f32.gmra.mxu1 %vm113_vm2, %v111_v27 }
  0x41   :  { %1659 = vmatmul.msk.f32.gmra.mxu0 %vm113_vm2, %v111_v27 }
  0x49   :  { %1661 = vmatmul.msk.f32.vlgmr.msrb.gmra.mxu0 %vm113_vm2, %v106_v9 }
  0x93   :  { %v262_v30 = vpop.f32.mrf.mxu2 }
  0x94   :  { %v315_v31 = vpop.f32.mrf.mxu3  ;;  %1680 = vmatmul.msk.f32.vlgmr.msra.gmra.mxu0 %vm113_vm2, %v262_v30 }
  0x95   :  { %1687 = vmatmul.msk.f32.vlgmr.msrb.gmra.mxu1 %vm113_vm2, %v315_v31 }
  0x96   :  { %v153_v45 = vpop.f32.mrf.mxu0 }
  0x97   :  { %v2205_v48 = vpop.f32.mrf.mxu1 }
  0x98   :  { %2896 = vst [vmem:[#allocation8_spill] sm:$0xff] %v2205_v48 }
  0x9b   :  { %v265_v32 = vpop.f32.mrf.mxu2 }
  0x9c   :  { %v318_v33 = vpop.f32.mrf.mxu3  ;;  %1681 = vmatmul.msk.f32.gmra.mxu0 %vm113_vm2, %v265_v32 }
  0x9d   :  { %1688 = vmatmul.msk.f32.gmra.mxu1 %vm113_vm2, %v318_v33 }
  0x9e   :  { %v156_v46 = vpop.f32.mrf.mxu0 }
  0x9f   :  { %v2207_v50 = vpop.f32.mrf.mxu1 }
  0xa0   :  { %2897 = vst [vmem:[#allocation9_spill] sm:$0xff] %v2207_v50 }
  0xa3   :  { %v268_v34 = vpop.f32.mrf.mxu2 }
  0xa4   :  { %v321_v35 = vpop.f32.mrf.mxu3  ;;  %1682 = vmatmul.msk.f32.gmra.mxu0 %vm113_vm2, %v268_v34 }
  0xa5   :  { %1689 = vmatmul.msk.f32.gmra.mxu1 %vm113_vm2, %v321_v35 }
  0xa6   :  { %v159_v47 = vpop.f32.mrf.mxu0 }
  0xa7   :  { %v2214_v53 = vpop.f32.mrf.mxu1 }
  0xa8   :  { %2898 = vst [vmem:[#allocation10_spill] sm:$0xff] %v2214_v53  ;;  %v2437_v53 = vmul.f32 -1e+30, %v94_v22 }
  0xab   :  { %v271_v36 = vpop.f32.mrf.mxu2 }
  0xac   :  { %v324_v37 = vpop.f32.mrf.mxu3  ;;  %1683 = vmatmul.msk.f32.gmra.mxu0 %vm113_vm2, %v271_v36  ;;  %v1940_v36 = vmov 4  }
  0xad   :  { %1690 = vmatmul.msk.f32.gmra.mxu1 %vm113_vm2, %v324_v37  ;;  %1793 = vset.pattern.permute.xlu1 %v1940_v36  ;;  %v1941_v37 = vmov 1  }
  0xae   :  { %v162_v49 = vpop.f32.mrf.mxu0  ;;  %1790 = vset.pattern.permute.xlu2 %v1941_v37 }
  0xaf   :  { %v2230_v59 = vpop.f32.mrf.mxu1 }
  0xb0   :  { %2899 = vst [vmem:[#allocation11_spill] sm:$0xff] %v2230_v59 }
  0xb3   :  { %v274_v41 = vpop.f32.mrf.mxu2 }
  0xb4   :  { %v327_v42 = vpop.f32.mrf.mxu3  ;;  %1684 = vmatmul.msk.f32.gmra.mxu0 %vm113_vm2, %v274_v41 }
  0xb5   :  { %1691 = vmatmul.msk.f32.gmra.mxu1 %vm113_vm2, %v327_v42 }
  0xb6   :  { %v2212_v52 = vpop.f32.mrf.mxu0 }
  0xb7   :  { %v2234_v61 = vpop.f32.mrf.mxu1 }
  0xb8   :  { %2901 = vst [vmem:[#allocation13_spill] sm:$0xff] %v2234_v61  ;;  %v98_v61 = vsub.f32 1.0, %v2149_v23 }
  0xba   :  { %v2444_v19 = vmul.f32 -1e+30, %v98_v61 }
  0xbb   :  { %v277_v43 = vpop.f32.mrf.mxu2 }
  0xbc   :  { %v330_v44 = vpop.f32.mrf.mxu3  ;;  %1685 = vmatmul.msk.f32.gmra.mxu0 %vm113_vm2, %v277_v43 }
  0xbd   :  { %1692 = vmatmul.msk.f32.gmra.mxu1 %vm113_vm2, %v330_v44  ;;  %vm1070_vm2 = vcmask 392192  }
  0xbe   :  { %v2228_v58 = vpop.f32.mrf.mxu0 }
  0xc6   :  { %v2232_v60 = vpop.f32.mrf.mxu0 }
  0xc7   :  { %2900 = vst [vmem:[#allocation12_spill] sm:$0xff] %v2232_v60  ;;  %v2442_v60 = vmul.f32 -1e+30, %v96_v14 }
 0x111   :  { %v374_v0 = vpop.f32.mrf.mxu0 }
 0x112   :  { %v433_v1 = vpop.f32.mrf.mxu1  ;;  %v2242_v4 = vadd.f32 %v1872_v62, %v374_v0 }
 0x113   :  { %v434_v8 = vadd.f32 %v1873_v63, %v433_v1 }
 0x114   :  { %2902 = vst [vmem:[#allocation14_spill] sm:$0xff] %v2242_v4 }
 0x115   :  { %v451_v9 = vadd.f32 %v434_v8, %v2242_v4 }
 0x117   :  { %v457_v11 = vadd.f32 %v451_v9, %v153_v45 }
 0x119   :  { %vm463_vm3 = vcmp.gt.f32.partialorder %v457_v11, 0.0  ;;  %v469_v12 = vmul.f32 0.2, %v457_v11  ;;  %v377_v13 = vpop.f32.mrf.mxu0 }
 0x11a   :  { %v436_v16 = vpop.f32.mrf.mxu1  ;;  %v2245_v20 = vadd.f32 %v1872_v62, %v377_v13 }
 0x11b   :  { %v437_v21 = vadd.f32 %v1873_v63, %v436_v16  ;;  %v475_v24 = vsel %vm463_vm3, %v457_v11, %v469_v12 }
 0x11c   :  { %2903 = vst [vmem:[#allocation15_spill] sm:$0xff] %v2245_v20  ;;  %1693 = vmatmul.msk.f32.vlgmr.msrb.gmra.mxu2 %vm481_vm4, %v475_v24 }
 0x11d   :  { %v452_v27 = vadd.f32 %v437_v21, %v2245_v20 }
 0x11f   :  { %v458_v28 = vadd.f32 %v452_v27, %v156_v46 }
 0x121   :  { %vm464_vm5 = vcmp.gt.f32.partialorder %v458_v28, 0.0  ;;  %v470_v29 = vmul.f32 0.2, %v458_v28  ;;  %v380_v30 = vpop.f32.mrf.mxu0 }
 0x122   :  { %v439_v31 = vpop.f32.mrf.mxu1  ;;  %v2249_v32 = vadd.f32 %v1872_v62, %v380_v30  ;;  %v1946_v30 = vmov 5  }
 0x123   :  { %v440_v33 = vadd.f32 %v1873_v63, %v439_v31  ;;  %v476_v34 = vsel %vm464_vm5, %v458_v28, %v470_v29  ;;  %v1947_v31 = vmov 7  }
 0x124   :  { %2904 = vst [vmem:[#allocation16_spill] sm:$0xff] %v2249_v32  ;;  %1694 = vmatmul.msk.f32.gmra.mxu2 %vm481_vm4, %v476_v34 }
 0x125   :  { %v453_v35 = vadd.f32 %v440_v33, %v2249_v32 }
 0x127   :  { %v459_v39 = vadd.f32 %v453_v35, %v159_v47 }
 0x129   :  { %vm465_vm6 = vcmp.gt.f32.partialorder %v459_v39, 0.0  ;;  %v471_v40 = vmul.f32 0.2, %v459_v39  ;;  %v383_v41 = vpop.f32.mrf.mxu0 }
 0x12a   :  { %v442_v42 = vpop.f32.mrf.mxu1  ;;  %v2256_v43 = vadd.f32 %v1872_v62, %v383_v41 }
 0x12b   :  { %v443_v44 = vadd.f32 %v1873_v63, %v442_v42  ;;  %v477_v45 = vsel %vm465_vm6, %v459_v39, %v471_v40 }
 0x12c   :  { %2905 = vst [vmem:[#allocation17_spill] sm:$0xff] %v2256_v43  ;;  %1695 = vmatmul.msk.f32.gmra.mxu2 %vm481_vm4, %v477_v45 }
 0x12d   :  { %v454_v46 = vadd.f32 %v443_v44, %v2256_v43 }
 0x12f   :  { %v460_v51 = vadd.f32 %v454_v46, %v162_v49 }
 0x131   :  { %vm466_vm7 = vcmp.gt.f32.partialorder %v460_v51, 0.0  ;;  %v472_v54 = vmul.f32 0.2, %v460_v51  ;;  %v386_v55 = vpop.f32.mrf.mxu0 }
 0x132   :  { %v445_v56 = vpop.f32.mrf.mxu1  ;;  %v2260_v57 = vadd.f32 %v1872_v62, %v386_v55 }
 0x133   :  { %v446_v47 = vadd.f32 %v1873_v63, %v445_v56  ;;  %v478_v0 = vsel %vm466_vm7, %v460_v51, %v472_v54 }
 0x134   :  { %2906 = vst [vmem:[#allocation18_spill] sm:$0xff] %v2260_v57  ;;  %1696 = vmatmul.msk.f32.gmra.mxu2 %vm481_vm4, %v478_v0 }
 0x135   :  { %v455_v1 = vadd.f32 %v446_v47, %v2260_v57 }
 0x137   :  { %v461_v8 = vadd.f32 %v455_v1, %v2212_v52 }
 0x139   :  { %vm467_vm8 = vcmp.gt.f32.partialorder %v461_v8, 0.0  ;;  %v473_v9 = vmul.f32 0.2, %v461_v8  ;;  %v389_v11 = vpop.f32.mrf.mxu0 }
 0x13a   :  { %v448_v12 = vpop.f32.mrf.mxu1  ;;  %v2265_v13 = vadd.f32 %v1872_v62, %v389_v11  ;;  %v1943_v62 = vmov 6  }
 0x13b   :  { %v449_v49 = vadd.f32 %v1873_v63, %v448_v12  ;;  %v479_v16 = vsel %vm467_vm8, %v461_v8, %v473_v9  ;;  %v1944_v63 = vmov 2  }
 0x13c   :  { %2907 = vst [vmem:[#allocation19_spill] sm:$0xff] %v2265_v13  ;;  %1697 = vmatmul.msk.f32.gmra.mxu2 %vm481_vm4, %v479_v16 }
 0x13d   :  { %v456_v21 = vadd.f32 %v449_v49, %v2265_v13 }
 0x13f   :  { %v462_v24 = vadd.f32 %v456_v21, %v2228_v58  ;;  %v1945_v58 = vmov 3  }
 0x141   :  { %vm468_vm9 = vcmp.gt.f32.partialorder %v462_v24, 0.0  ;;  %v474_v27 = vmul.f32 0.2, %v462_v24 }
 0x143   :  { %v480_v28 = vsel %vm468_vm9, %v462_v24, %v474_v27 }
 0x144   :  { %1698 = vmatmul.msk.f32.gmra.mxu2 %vm481_vm4, %v480_v28 }
 0x19f   :  { %v2271_v52 = vpop.f32.mrf.mxu2 }
 0x1a0   :  { %730 = vperm.xlu1 %1793, %v2271_v52   ;;  %589 = vperm.xlu2 %1790, %v2271_v52  }
 0x1a1   :  { %537 = vperm.xlu0 %1789, %v2271_v52  }
 0x1a7   :  { %v2283_v29 = vpop.f32.mrf.mxu2 }
 0x1a8   :  { %1795 = vset.pattern.permute.xlu1 %v1943_v62  ;;  %1791 = vset.pattern.permute.xlu2 %v1944_v63 }
 0x1a9   :  { %1792 = vset.pattern.permute.xlu0 %v1945_v58  ;;  %824 = vperm.xlu1 %1795, %v2271_v52  }
 0x1aa   :  { %636 = vperm.xlu2 %1791, %v2271_v52   ;;  %683 = vperm.xlu0 %1792, %v2271_v52  }
 0x1af   :  { %v2297_v33 = vpop.f32.mrf.mxu2 }
 0x1b1   :  { %1799 = vset.pattern.permute.xlu1 %v1944_v63 }
 0x1b2   :  { %1794 = vset.pattern.permute.xlu2 %v1946_v30  ;;  %1797 = vset.pattern.permute.xlu0 %v1942_v38 }
 0x1b3   :  { %777 = vperm.xlu2 %1794, %v2271_v52   ;;  %640 = vperm.xlu1 %1799, %v2283_v29  }
 0x1b4   :  { %542 = vperm.xlu0 %1797, %v2283_v29  }
 0x1b7   :  { %v2306_v34 = vpop.f32.mrf.mxu2 }
 0x1bb   :  { %1796 = vset.pattern.permute.xlu2 %v1947_v31  ;;  %1800 = vset.pattern.permute.xlu1 %v1945_v58 }
 0x1bc   :  { %1804 = vset.pattern.permute.xlu0 %v1947_v31  ;;  %871 = vperm.xlu2 %1796, %v2271_v52  }
 0x1bd   :  { %687 = vperm.xlu1 %1800, %v2283_v29   ;;  %875 = vperm.xlu0 %1804, %v2283_v29  }
 0x1bf   :  { %v2315_v35 = vpop.f32.mrf.mxu2 }
 0x1c4   :  { %1798 = vset.pattern.permute.xlu2 %v1941_v37 }
 0x1c5   :  { %1802 = vset.pattern.permute.xlu1 %v1946_v30  ;;  %1808 = vset.pattern.permute.xlu0 %v1945_v58 }
 0x1c6   :  { %781 = vperm.xlu1 %1802, %v2283_v29   ;;  %593 = vperm.xlu2 %1798, %v2283_v29  }
 0x1c7   :  { %691 = vperm.xlu0 %1808, %v2297_v33   ;;  %v2329_v39 = vpop.f32.mrf.mxu2 }
 0x1ce   :  { %1805 = vset.pattern.permute.xlu1 %v1942_v38  ;;  %1801 = vset.pattern.permute.xlu2 %v1940_v36 }
 0x1cf   :  { %1814 = vset.pattern.permute.xlu0 %v1944_v63  ;;  %734 = vperm.xlu2 %1801, %v2283_v29  }
 0x1d0   :  { %547 = vperm.xlu1 %1805, %v2297_v33   ;;  %648 = vperm.xlu0 %1814, %v2306_v34  }
 0x1d7   :  { %1803 = vset.pattern.permute.xlu2 %v1943_v62 }
 0x1d8   :  { %1806 = vset.pattern.permute.xlu1 %v1941_v37  ;;  %1819 = vset.pattern.permute.xlu0 %v1941_v37 }
 0x1d9   :  { %828 = vperm.xlu2 %1803, %v2283_v29   ;;  %597 = vperm.xlu1 %1806, %v2297_v33  }
 0x1da   :  { %605 = vperm.xlu0 %1819, %v2315_v35  }
 0x1e1   :  { %1807 = vset.pattern.permute.xlu2 %v1944_v63  ;;  %1809 = vset.pattern.permute.xlu1 %v1940_v36 }
 0x1e2   :  { %1824 = vset.pattern.permute.xlu0 %v1943_v62  ;;  %644 = vperm.xlu2 %1807, %v2297_v33  }
 0x1e3   :  { %738 = vperm.xlu1 %1809, %v2297_v33   ;;  %840 = vperm.xlu0 %1824, %v2315_v35  }
 0x1ea   :  { %1810 = vset.pattern.permute.xlu2 %v1946_v30 }
 0x1eb   :  { %1811 = vset.pattern.permute.xlu1 %v1943_v62  ;;  %1828 = vset.pattern.permute.xlu0 %v1944_v63 }
 0x1ec   :  { %785 = vperm.xlu2 %1810, %v2297_v33   ;;  %832 = vperm.xlu1 %1811, %v2297_v33  }
 0x1ed   :  { %656 = vperm.xlu0 %1828, %v2329_v39  }
 0x1f4   :  { %1812 = vset.pattern.permute.xlu2 %v1942_v38  ;;  %1815 = vset.pattern.permute.xlu1 %v1945_v58 }
 0x1f5   :  { %1831 = vset.pattern.permute.xlu0 %v1946_v30  ;;  %695 = vperm.xlu1 %1815, %v2306_v34  }
 0x1f6   :  { %552 = vperm.xlu2 %1812, %v2306_v34   ;;  %797 = vperm.xlu0 %1831, %v2329_v39  }
 0x1fa   :  { %v2340_v40 = vpop.permute.xlu2 %589 }
 0x1fd   :  { %1817 = vset.pattern.permute.xlu1 %v1946_v30 }
 0x1fe   :  { %1813 = vset.pattern.permute.xlu2 %v1941_v37  ;;  %1835 = vset.pattern.permute.xlu0 %v1947_v31 }
 0x1ff   :  { %789 = vperm.xlu1 %1817, %v2306_v34   ;;  %601 = vperm.xlu2 %1813, %v2306_v34  }
 0x200   :  { %879 = vperm.xlu0 %1835, %v2297_v33  }
 0x204   :  { %v2348_v41 = vpop.permute.xlu2 %636 }
 0x207   :  { %1818 = vset.pattern.permute.xlu1 %v1942_v38  ;;  %1816 = vset.pattern.permute.xlu2 %v1940_v36 }
 0x208   :  { %742 = vperm.xlu2 %1816, %v2306_v34   ;;  %557 = vperm.xlu1 %1818, %v2315_v35  }
 0x209   :  { %1854 = vset.pattern.permute.xlu0 %v1942_v38 }
 0x20d   :  { %v2355_v42 = vpop.permute.xlu2 %777 }
 0x210   :  { %1820 = vset.pattern.permute.xlu2 %v1944_v63  ;;  %1822 = vset.pattern.permute.xlu1 %v1940_v36 }
 0x211   :  { %652 = vperm.xlu2 %1820, %v2315_v35   ;;  %746 = vperm.xlu1 %1822, %v2315_v35  }
 0x212   :  { %v2361_v44 = vpop.permute.xlu1 %730 }
 0x213   :  { %v2363_v45 = vpop.permute.xlu0 %537 }
 0x216   :  { %v2365_v46 = vpop.permute.xlu2 %871 }
 0x219   :  { %1821 = vset.pattern.permute.xlu2 %v1945_v58  ;;  %1825 = vset.pattern.permute.xlu1 %v1947_v31 }
 0x21a   :  { %699 = vperm.xlu2 %1821, %v2315_v35   ;;  %887 = vperm.xlu1 %1825, %v2315_v35  }
 0x21b   :  { %v2371_v51 = vpop.permute.xlu1 %824 }
 0x21c   :  { %v2373_v54 = vpop.permute.xlu0 %683 }
 0x220   :  { %v2375_v55 = vpop.permute.xlu2 %593 }
 0x222   :  { %1823 = vset.pattern.permute.xlu2 %v1946_v30  ;;  %1826 = vset.pattern.permute.xlu1 %v1942_v38  ;;  %v99_v30 = vsub.f32 1.0, %v2162_v26 }
 0x223   :  { %793 = vperm.xlu2 %1823, %v2315_v35   ;;  %562 = vperm.xlu1 %1826, %v2329_v39  }
 0x224   :  { %v2429_v17 = vmul.f32 -1e+30, %v99_v30  ;;  %v659_v30 = vadd.f32 %v2348_v41, %v2437_v53 }
 0x225   :  { %v641_v56 = vpop.permute.xlu1 %640 }
 0x226   :  { %v2381_v47 = vpop.permute.xlu0 %542 }
 0x229   :  { %v2383_v0 = vpop.permute.xlu2 %734 }
 0x22b   :  { %1830 = vset.pattern.permute.xlu2 %v1940_v36  ;;  %1827 = vset.pattern.permute.xlu1 %v1941_v37 }
 0x22c   :  { %750 = vperm.xlu2 %1830, %v2329_v39   ;;  %609 = vperm.xlu1 %1827, %v2329_v39  }
 0x22f   :  { %v2389_v1 = vpop.permute.xlu1 %687  ;;  %v2391_v8 = vpop.permute.xlu0 %875 }
 0x233   :  { %v2393_v9 = vpop.permute.xlu2 %828 }
 0x234   :  { %1833 = vset.pattern.permute.xlu2 %v1947_v31  ;;  %1829 = vset.pattern.permute.xlu1 %v1945_v58 }
 0x235   :  { %891 = vperm.xlu2 %1833, %v2329_v39   ;;  %703 = vperm.xlu1 %1829, %v2329_v39  }
 0x238   :  { %v782_v36 = vpop.permute.xlu1 %781 }
 0x239   :  { %v2399_v11 = vpop.permute.xlu0 %691 }
 0x23c   :  { %v645_v37 = vpop.permute.xlu2 %644 }
 0x23d   :  { %1834 = vset.pattern.permute.xlu2 %v1943_v62  ;;  %1832 = vset.pattern.permute.xlu1 %v1943_v62  ;;  %v661_v4 = vadd.f32 %v645_v37, %v2442_v60 }
 0x23e   :  { %836 = vperm.xlu2 %1834, %v2306_v34   ;;  %844 = vperm.xlu1 %1832, %v2329_v39  }
 0x242   :  { %v2405_v12 = vpop.permute.xlu1 %547  ;;  %v649_v16 = vpop.permute.xlu0 %648 }
 0x246   :  { %1836 = vset.pattern.permute.xlu1 %v1947_v31  ;;  %v786_v49 = vpop.permute.xlu2 %785  ;;  %1853 = vset.pattern.permute.xlu2 %v1942_v38  ;;  %v97_v31 = vsub.f32 1.0, %v2128_v18 }
 0x247   :  { %883 = vperm.xlu1 %1836, %v2306_v34  }
 0x248   :  { %v2432_v3 = vmul.f32 -1e+30, %v97_v31 }
 0x24a   :  { %v662_v10 = vadd.f32 %v649_v16, %v2432_v3 }
 0x24b   :  { %v2410_v21 = vpop.permute.xlu1 %597 }
 0x24c   :  { %v2415_v27 = vpop.permute.xlu0 %605  ;;  %v668_v61 = vsel %vm226_vm0, %v662_v10, -inf  ;;  %v800_v10 = vadd.f32 %v2355_v42, %v2437_v53 }
 0x24f   :  { %1852 = vset.pattern.permute.xlu1 %v1942_v38  ;;  %v95_v38 = vsub.f32 1.0, %v2082_v7 }
 0x250   :  { %v2413_v24 = vpop.permute.xlu2 %552 }
 0x251   :  { %v2439_v50 = vmul.f32 -1e+30, %v95_v38 }
 0x253   :  { %v660_v31 = vadd.f32 %v641_v56, %v2439_v50  ;;  %v667_v56 = vsel %vm226_vm0, %v661_v4, -inf  ;;  %v802_v4 = vadd.f32 %v786_v49, %v2442_v60 }
 0x254   :  { %v674_v16 = vmax.f32 %v667_v56, %v668_v61 }
 0x255   :  { %v2417_v28 = vpop.permute.xlu1 %738  ;;  %v2421_v63 = vpop.permute.xlu0 %840  ;;  %v666_v14 = vsel %vm226_vm0, %v660_v31, -inf  ;;  %v801_v31 = vadd.f32 %v782_v36, %v2439_v50  ;;  %v808_v36 = vsel %vm226_vm0, %v802_v4, -inf }
 0x259   :  { %v2419_v62 = vpop.permute.xlu2 %601 }
 0x25e   :  { %v2423_v58 = vpop.permute.xlu1 %832 }
 0x25f   :  { %v657_v6 = vpop.permute.xlu0 %656 }
 0x260   :  { %v664_v48 = vadd.f32 %v657_v6, %v2429_v17  ;;  %v665_v6 = vsel %vm226_vm0, %v659_v30, -inf }
 0x262   :  { %v743_v25 = vpop.permute.xlu2 %742  ;;  %v671_v22 = vsel %vm226_vm0, %v664_v48, -inf }
 0x263   :  { %v672_v41 = vmax.f32 %v666_v14, %v671_v22 }
 0x267   :  { %v2435_v59 = vpop.permute.xlu1 %695 }
 0x26b   :  { %v653_v2 = vpop.permute.xlu2 %652 }
 0x26c   :  { %v663_v38 = vadd.f32 %v653_v2, %v2444_v19  ;;  %v798_v2 = vpop.permute.xlu0 %797 }
 0x26d   :  { %v805_v30 = vadd.f32 %v798_v2, %v2429_v17  ;;  %v753_v2 = vadd.f32 %v2361_v44, %v2437_v53 }
 0x26e   :  { %v669_v20 = vsel %vm226_vm0, %v663_v38, -inf  ;;  %v806_v38 = vsel %vm226_vm0, %v800_v10, -inf  ;;  %v756_v10 = vadd.f32 %v743_v25, %v2432_v3 }
 0x26f   :  { %v670_v32 = vmax.f32 %v665_v6, %v669_v20  ;;  %v807_v6 = vsel %vm226_vm0, %v801_v31, -inf }
 0x270   :  { %v762_v44 = vsel %vm226_vm0, %v756_v10, -inf }
 0x271   :  { %v673_v43 = vmax.f32 %v670_v32, %v672_v41  ;;  %v790_v13 = vpop.permute.xlu1 %789  ;;  %v812_v32 = vsel %vm226_vm0, %v805_v30, -inf  ;;  %v754_v30 = vadd.f32 %v2383_v0, %v2439_v50 }
 0x272   :  { %v803_v20 = vadd.f32 %v790_v13, %v2432_v3  ;;  %v813_v42 = vmax.f32 %v807_v6, %v812_v32 }
 0x273   :  { %v2458_v37 = vmax.f32 %v673_v43, %v674_v16 }
 0x274   :  { %v2460_v48 = vpop.permute.xlu2 %699  ;;  %v809_v14 = vsel %vm226_vm0, %v803_v20, -inf }
 0x275   :  { %v815_v13 = vmax.f32 %v808_v36, %v809_v14 }
 0x27a   :  { %v558_v57 = vpop.permute.xlu1 %557 }
 0x27b   :  { %v569_v36 = vadd.f32 %v558_v57, %v2444_v19 }
 0x27d   :  { %v794_v22 = vpop.permute.xlu2 %793 }
 0x27e   :  { %v804_v43 = vadd.f32 %v794_v22, %v2444_v19  ;;  %v755_v22 = vadd.f32 %v2417_v28, %v2442_v60 }
 0x280   :  { %v810_v61 = vsel %vm226_vm0, %v804_v43, -inf  ;;  %v759_v43 = vsel %vm226_vm0, %v753_v2, -inf  ;;  %v761_v14 = vsel %vm226_vm0, %v755_v22, -inf  ;;  %v567_v2 = vadd.f32 %v2405_v12, %v2442_v60 }
 0x281   :  { %v811_v41 = vmax.f32 %v806_v38, %v810_v61  ;;  %v760_v38 = vsel %vm226_vm0, %v754_v30, -inf  ;;  %v768_v61 = vmax.f32 %v761_v14, %v762_v44  ;;  %v575_v30 = vsel %vm226_vm0, %v569_v36, -inf }
 0x282   :  { %v613_v44 = vadd.f32 %v2375_v55, %v2439_v50 }
 0x283   :  { %v814_v56 = vmax.f32 %v811_v41, %v813_v42  ;;  %v747_v16 = vpop.permute.xlu1 %746 }
 0x284   :  { %v757_v49 = vadd.f32 %v747_v16, %v2444_v19  ;;  %v568_v16 = vadd.f32 %v2413_v24, %v2432_v3  ;;  %v573_v24 = vsel %vm226_vm0, %v567_v2, -inf }
 0x285   :  { %v2481_v31 = vmax.f32 %v814_v56, %v815_v13  ;;  %v565_v13 = vadd.f32 %v2363_v45, %v2437_v53  ;;  %v566_v56 = vadd.f32 %v2381_v47, %v2439_v50 }
 0x286   :  { %v751_v20 = vpop.permute.xlu2 %750  ;;  %v763_v4 = vsel %vm226_vm0, %v757_v49, -inf  ;;  %v574_v45 = vsel %vm226_vm0, %v568_v16, -inf }
 0x287   :  { %v758_v32 = vadd.f32 %v751_v20, %v2429_v17  ;;  %v764_v6 = vmax.f32 %v759_v43, %v763_v4  ;;  %v571_v20 = vsel %vm226_vm0, %v565_v13, -inf  ;;  %v572_v57 = vsel %vm226_vm0, %v566_v56, -inf }
 0x288   :  { %v576_v47 = vmax.f32 %v571_v20, %v575_v30  ;;  %v580_v12 = vmax.f32 %v573_v24, %v574_v45  ;;  %v619_v13 = vsel %vm226_vm0, %v613_v44, -inf  ;;  %v710_v20 = vadd.f32 %v2460_v48, %v2444_v19 }
 0x289   :  { %v765_v0 = vsel %vm226_vm0, %v758_v32, -inf  ;;  %v616_v32 = vadd.f32 %v2415_v27, %v2444_v19  ;;  %v676_v27 = vrot.slane %v2458_v37, 4  ;;  %v706_v45 = vadd.f32 %v2373_v54, %v2437_v53 }
 0x28a   :  { %v766_v25 = vmax.f32 %v760_v38, %v765_v0  ;;  %v612_v38 = vadd.f32 %v2340_v40, %v2437_v53  ;;  %v615_v0 = vadd.f32 %v2419_v62, %v2432_v3 }
 0x28b   :  { %v677_v30 = vmax.f32 %v2458_v37, %v676_v27  ;;  %v708_v37 = vadd.f32 %v2399_v11, %v2442_v60  ;;  %v712_v44 = vsel %vm226_vm0, %v706_v45, -inf }
 0x28c   :  { %v767_v42 = vmax.f32 %v764_v6, %v766_v25  ;;  %v2492_v41 = vpop.permute.xlu1 %887  ;;  %v614_v25 = vadd.f32 %v2410_v21, %v2442_v60  ;;  %v618_v40 = vsel %vm226_vm0, %v612_v38, -inf  ;;  %v621_v55 = vsel %vm226_vm0, %v615_v0, -inf }
 0x28d   :  { %v851_v0 = vadd.f32 %v2421_v63, %v2444_v19 }
 0x28e   :  { %v2494_v28 = vmax.f32 %v767_v42, %v768_v61  ;;  %v622_v61 = vsel %vm226_vm0, %v616_v32, -inf  ;;  %v620_v2 = vsel %vm226_vm0, %v614_v25, -inf  ;;  %v847_v32 = vadd.f32 %v2371_v51, %v2437_v53 }
 0x28f   :  { %v623_v56 = vmax.f32 %v618_v40, %v622_v61  ;;  %v892_v16 = vpop.permute.xlu2 %891  ;;  %v817_v51 = vrot.slane %v2481_v31, 4  ;;  %v848_v61 = vadd.f32 %v2393_v9, %v2439_v50  ;;  %v714_v40 = vsel %vm226_vm0, %v708_v37, -inf }
 0x290   :  { %v770_v54 = vrot.slane %v2494_v28, 4  ;;  %v895_v9 = vadd.f32 %v2391_v8, %v2439_v50  ;;  %v899_v8 = vadd.f32 %v892_v16, %v2429_v17 }
 0x295   :  { %v563_v49 = vpop.permute.xlu1 %562 }
 0x296   :  { %v570_v10 = vadd.f32 %v563_v49, %v2429_v17 }
 0x298   :  { %v577_v22 = vsel %vm226_vm0, %v570_v10, -inf  ;;  %v627_v10 = vmax.f32 %v620_v2, %v621_v55  ;;  %v837_v55 = vpop.permute.xlu2 %836  ;;  %v853_v2 = vsel %vm226_vm0, %v847_v32, -inf }
 0x299   :  { %v578_v4 = vmax.f32 %v572_v57, %v577_v22  ;;  %v707_v22 = vadd.f32 %v2389_v1, %v2439_v50 }
 0x29b   :  { %v579_v43 = vmax.f32 %v576_v47, %v578_v4  ;;  %v709_v47 = vadd.f32 %v2435_v59, %v2432_v3  ;;  %v713_v59 = vsel %vm226_vm0, %v707_v22, -inf }
 0x29d   :  { %v581_v6 = vmax.f32 %v579_v43, %v580_v12  ;;  %v678_v12 = vrot.slane %v677_v30, 2  ;;  %v716_v43 = vsel %vm226_vm0, %v710_v20, -inf  ;;  %v715_v11 = vsel %vm226_vm0, %v709_v47, -inf }
 0x29e   :  { %v610_v14 = vpop.permute.xlu1 %609  ;;  %v854_v20 = vsel %vm226_vm0, %v848_v61, -inf  ;;  %v849_v47 = vadd.f32 %v2423_v58, %v2442_v60  ;;  %v880_v58 = vpop.permute.xlu0 %879  ;;  %v894_v61 = vadd.f32 %v2365_v46, %v2437_v53 }
 0x29f   :  { %v582_v42 = vrot.slane %v581_v6, 4  ;;  %v617_v36 = vadd.f32 %v610_v14, %v2429_v17  ;;  %v679_v27 = vmax.f32 %v677_v30, %v678_v12 }
 0x2a1   :  { %v624_v62 = vsel %vm226_vm0, %v617_v36, -inf  ;;  %v583_v49 = vmax.f32 %v581_v6, %v582_v42  ;;  %v717_v42 = vmax.f32 %v712_v44, %v716_v43 }
 0x2a2   :  { %v625_v21 = vmax.f32 %v619_v13, %v624_v62  ;;  %v771_v13 = vmax.f32 %v2494_v28, %v770_v54  ;;  %v857_v62 = vsel %vm226_vm0, %v851_v0, -inf  ;;  %v850_v28 = vadd.f32 %v837_v55, %v2432_v3 }
 0x2a3   :  { %v584_v4 = vrot.slane %v583_v49, 2  ;;  %v858_v22 = vmax.f32 %v853_v2, %v857_v62  ;;  %v898_v0 = vadd.f32 %v2492_v41, %v2444_v19  ;;  %v901_v55 = vsel %vm226_vm0, %v895_v9, -inf }
 0x2a4   :  { %v626_v57 = vmax.f32 %v623_v56, %v625_v21  ;;  %v721_v56 = vmax.f32 %v714_v40, %v715_v11  ;;  %v896_v40 = vadd.f32 %v880_v58, %v2442_v60 }
 0x2a5   :  { %v585_v6 = vmax.f32 %v583_v49, %v584_v4  ;;  %v818_v49 = vmax.f32 %v2481_v31, %v817_v51  ;;  %v772_v4 = vrot.slane %v771_v13, 2 }
 0x2a6   :  { %v628_v24 = vmax.f32 %v626_v57, %v627_v10  ;;  %v680_v57 = vrot.slane %v679_v27, 1 }
 0x2a7   :  { %v704_v48 = vpop.permute.xlu1 %703  ;;  %v586_v30 = vrot.slane %v585_v6, 1  ;;  %v819_v37 = vrot.slane %v818_v49, 2 }
 0x2a8   :  { %v629_v38 = vrot.slane %v628_v24, 4  ;;  %v711_v1 = vadd.f32 %v704_v48, %v2429_v17  ;;  %v681_v54 = vmax.f32 %v679_v27, %v680_v57  ;;  %v906_v27 = vsel %vm226_vm0, %v899_v8, -inf }
 0x2a9   :  { %v587_v48 = vmax.f32 %v585_v6, %v586_v30  ;;  %v900_v30 = vsel %vm226_vm0, %v894_v61, -inf }
 0x2aa   :  { %v630_v25 = vmax.f32 %v628_v24, %v629_v38  ;;  %v718_v14 = vsel %vm226_vm0, %v711_v1, -inf  ;;  %v856_v38 = vsel %vm226_vm0, %v850_v28, -inf }
 0x2ab   :  { %v719_v36 = vmax.f32 %v713_v59, %v718_v14  ;;  %v773_v59 = vmax.f32 %v771_v13, %v772_v4  ;;  %v820_v14 = vmax.f32 %v818_v49, %v819_v37 }
 0x2ac   :  { %v631_v63 = vrot.slane %v630_v25, 2 }
 0x2ad   :  { %v720_v21 = vmax.f32 %v717_v42, %v719_v36  ;;  %v774_v41 = vrot.slane %v773_v59, 1  ;;  %v821_v2 = vrot.slane %v820_v14, 1 }
 0x2ae   :  { %v632_v10 = vmax.f32 %v630_v25, %v631_v63  ;;  %v855_v25 = vsel %vm226_vm0, %v849_v47, -inf  ;;  %v904_v63 = vsel %vm226_vm0, %v898_v0, -inf }
 0x2af   :  { %v722_v45 = vmax.f32 %v720_v21, %v721_v56  ;;  %v862_v42 = vmax.f32 %v855_v25, %v856_v38  ;;  %v907_v56 = vmax.f32 %v901_v55, %v906_v27  ;;  %v905_v57 = vmax.f32 %v900_v30, %v904_v63  ;;  %v224_v25 = vld [vmem:[%s2852_s11] sm:$0xff]  ;;  %s1952_s11 = smov 128  }
 0x2b0   :  { %v633_v31 = vrot.slane %v632_v10, 1  ;;  %v845_v24 = vpop.permute.xlu1 %844  ;;  %1020 = vmatpush.msrb.mxu0 %v224_v25  ;;  %1125 = vmatpush.msra.mxu2 %v224_v25 }
 0x2b1   :  { %v723_v32 = vrot.slane %v722_v45, 4  ;;  %v852_v12 = vadd.f32 %v845_v24, %v2429_v17  ;;  %v908_v47 = vmax.f32 %v905_v57, %v907_v56 }
 0x2b2   :  { %v634_v43 = vmax.f32 %v632_v10, %v633_v31  ;;  %v822_v31 = vmax.f32 %v820_v14, %v821_v2 }
 0x2b3   :  { %v724_v1 = vmax.f32 %v722_v45, %v723_v32  ;;  %v859_v44 = vsel %vm226_vm0, %v852_v12, -inf }
 0x2b4   :  { %v860_v51 = vmax.f32 %v854_v20, %v859_v44  ;;  %v918_v11 = vsel %vm917_vm10, %v587_v48, %v634_v43  ;;  %v902_v20 = vsel %vm226_vm0, %v896_v40, -inf }
 0x2b5   :  { %v725_v16 = vrot.slane %v724_v1, 2  ;;  %v920_v6 = vsel %vm919_vm11, %v918_v11, %v681_v54 }
 0x2b6   :  { %v861_v36 = vmax.f32 %v858_v22, %v860_v51  ;;  %v775_v22 = vmax.f32 %v773_v59, %v774_v41 }
 0x2b7   :  { %v726_v13 = vmax.f32 %v724_v1, %v725_v16 }
 0x2b8   :  { %v863_v62 = vmax.f32 %v861_v36, %v862_v42 }
 0x2b9   :  { %v727_v49 = vrot.slane %v726_v13, 1  ;;  %v884_v21 = vpop.permute.xlu1 %883 }
 0x2ba   :  { %v864_v46 = vrot.slane %v863_v62, 4  ;;  %v897_v10 = vadd.f32 %v884_v21, %v2432_v3 }
 0x2bb   :  { %v728_v28 = vmax.f32 %v726_v13, %v727_v49 }
 0x2bc   :  { %v865_v45 = vmax.f32 %v863_v62, %v864_v46  ;;  %v903_v9 = vsel %vm226_vm0, %v897_v10, -inf }
 0x2bd   :  { %v909_v4 = vmax.f32 %v902_v20, %v903_v9  ;;  %v922_v24 = vsel %vm921_vm12, %v920_v6, %v728_v28 }
 0x2be   :  { %v866_v37 = vrot.slane %v865_v45, 2  ;;  %v923_v32 = vsel %vm132_vm1, %v922_v24, %v775_v22  ;;  %vm986_vm1 = vcmask 64512  }
 0x2bf   :  { %v910_v12 = vmax.f32 %v908_v47, %v909_v4  ;;  %v925_v8 = vsel %vm924_vm13, %v923_v32, %v822_v31  ;;  %v2909_v32 = vld [vmem:[#allocation19_spill] sm:$0xff] }
 0x2c0   :  { %v867_v48 = vmax.f32 %v865_v45, %v866_v37 }
 0x2c1   :  { %v911_v43 = vrot.slane %v910_v12, 4 }
 0x2c2   :  { %v868_v54 = vrot.slane %v867_v48, 1 }
 0x2c3   :  { %v912_v38 = vmax.f32 %v910_v12, %v911_v43  ;;  %v2910_v43 = vld [vmem:[#allocation17_spill] sm:$0xff] }
 0x2c4   :  { %v869_v1 = vmax.f32 %v867_v48, %v868_v54 }
 0x2c5   :  { %v913_v44 = vrot.slane %v912_v38, 2 }
 0x2c6   :  { %v927_v58 = vsel %vm926_vm14, %v925_v8, %v869_v1 }
 0x2c7   :  { %v914_v0 = vmax.f32 %v912_v38, %v913_v44 }
 0x2c9   :  { %v915_v59 = vrot.slane %v914_v0, 1 }
 0x2cb   :  { %v916_v51 = vmax.f32 %v914_v0, %v915_v59 }
 0x2cd   :  { %v929_v11 = vsel %vm928_vm15, %v927_v58, %v916_v51  ;;  %v2911_v58 = vld [vmem:[#allocation16_spill] sm:$0xff] }
 0x2ce   :  { %1699 = vmatpush.xpose.msk.msrb.mxu3 %vm226_vm0, %v929_v11  ;;  %v2912_v11 = vld [vmem:[#allocation15_spill] sm:$0xff] }
 0x2d1   :  { %1700 = vmatmul.msk.f32.vlgmr.msrb.gmra.mxu3 %vm226_vm0, %v2074_v5 }
 0x2d9   :  { %1701 = vmatmul.msk.f32.gmra.mxu3 %vm226_vm0, %v2082_v7 }
 0x2e1   :  { %1702 = vmatmul.msk.f32.gmra.mxu3 %vm226_vm0, %v2115_v15 }
 0x2e9   :  { %1703 = vmatmul.msk.f32.gmra.mxu3 %vm226_vm0, %v2128_v18 }
 0x2f1   :  { %1704 = vmatmul.msk.f32.gmra.mxu3 %vm226_vm0, %v2149_v23 }
 0x2f9   :  { %1705 = vmatmul.msk.f32.gmra.mxu3 %vm226_vm0, %v2162_v26 }
 0x354   :  { %v950_v14 = vpop.f32.mrf.mxu3 }
 0x355   :  { %v968_v16 = vsub.f32 %v2271_v52, %v950_v14 }
 0x357   :  { %v974_v6 = vmul.f32 1.442695, %v968_v16  ;;  %v2626_v16 = vld [vmem:[%s2913_s1] sm:$0xff]  }
 0x359   :  { %1878 = vpow2.f32 %v974_v6 }
 0x35c   :  { %v953_v61 = vpop.f32.mrf.mxu3 }
 0x35d   :  { %v969_v27 = vsub.f32 %v2283_v29, %v953_v61 }
 0x35f   :  { %v1879_v42 = vpop.eup %1878  ;;  %v976_v36 = vmul.f32 1.442695, %v969_v27  ;;  %v2914_v27 = vld [vmem:[#allocation14_spill] sm:$0xff] }
 0x360   :  { %1706 = vmatmul.msk.f32.vlgmr.msrb.gmra.mxu0 %vm986_vm1, %v1879_v42 }
 0x361   :  { %1880 = vpow2.f32 %v976_v36 }
 0x364   :  { %v956_v40 = vpop.f32.mrf.mxu3 }
 0x365   :  { %v970_v13 = vsub.f32 %v2297_v33, %v956_v40 }
 0x367   :  { %v1881_v55 = vpop.eup %1880  ;;  %v978_v41 = vmul.f32 1.442695, %v970_v13  ;;  %v1768_v13 = vunpack.c.l.bf16 %v2626_v16 }
 0x368   :  { %1707 = vmatmul.msk.f32.gmra.mxu0 %vm986_vm1, %v1881_v55  ;;  %v1847_v63 = vpack.i.bf16 %v1879_v42, %v1881_v55 }
 0x369   :  { %1882 = vpow2.f32 %v978_v41  ;;  %v1769_v41 = vunpack.c.h.bf16 %v2626_v16 }
 0x36a   :  { %1848 = vrot.lane.b32.xlu1 %v1847_v63, %s1948_s10 }
 0x36c   :  { %v959_v52 = vpop.f32.mrf.mxu3 }
 0x36d   :  { %v971_v29 = vsub.f32 %v2306_v34, %v959_v52 }
 0x36f   :  { %v1883_v62 = vpop.eup %1882  ;;  %v980_v56 = vmul.f32 1.442695, %v971_v29 }
 0x370   :  { %1708 = vmatmul.msk.f32.gmra.mxu0 %vm986_vm1, %v1883_v62 }
 0x371   :  { %1884 = vpow2.f32 %v980_v56  ;;  %v1185_v56 = vld [vmem:[%s2854_s13 + $0x38] sm:$0xff] }
 0x372   :  { %1216 = vmatpush.msra.mxu3 %v1185_v56 }
 0x374   :  { %v962_v49 = vpop.f32.mrf.mxu3 }
 0x375   :  { %v972_v33 = vsub.f32 %v2315_v35, %v962_v49  ;;  %v1194_v49 = vld [vmem:[%s2856_s15 + $0x38] sm:$0xff] }
 0x377   :  { %v1885_v21 = vpop.eup %1884  ;;  %v982_v2 = vmul.f32 1.442695, %v972_v33  ;;  %v1184_v33 = vld [vmem:[%s2854_s13 + $0x30] sm:$0xff] }
 0x378   :  { %1709 = vmatmul.msk.f32.gmra.mxu0 %vm986_vm1, %v1885_v21  ;;  %v1842_v30 = vpack.i.bf16 %v1883_v62, %v1885_v21  ;;  %v1193_v21 = vld [vmem:[%s2856_s15 + $0x30] sm:$0xff]  ;;  %1217 = vmatpush.msra.mxu3 %v1184_v33 }
 0x379   :  { %1886 = vpow2.f32 %v982_v2  ;;  %v1183_v2 = vld [vmem:[%s2854_s13 + $0x28] sm:$0xff] }
 0x37a   :  { %1843 = vrot.lane.b32.xlu0 %v1842_v30, %s1948_s10  ;;  %v1192_v30 = vld [vmem:[%s2856_s15 + $0x28] sm:$0xff]  ;;  %1218 = vmatpush.msra.mxu3 %v1183_v2 }
 0x37c   :  { %v965_v46 = vpop.f32.mrf.mxu3 }
 0x37d   :  { %v973_v10 = vsub.f32 %v2329_v39, %v965_v46  ;;  %v2908_v39 = vld [vmem:[#allocation18_spill] sm:$0xff]  ;;  %v1182_v46 = vld [vmem:[%s2854_s13 + $0x20] sm:$0xff] }
 0x37e   :  { %1219 = vmatpush.msra.mxu3 %v1182_v46 }
 0x37f   :  { %v1887_v34 = vpop.eup %1886  ;;  %v984_v20 = vmul.f32 1.442695, %v973_v10  ;;  %v1191_v10 = vld [vmem:[%s2856_s15 + $0x20] sm:$0xff] }
 0x380   :  { %1710 = vmatmul.msk.f32.gmra.mxu0 %vm986_vm1, %v1887_v34 }
 0x381   :  { %1888 = vpow2.f32 %v984_v20  ;;  %v1190_v20 = vld [vmem:[%s2856_s15 + $0x18] sm:$0xff] }
 0x387   :  { %v1889_v57 = vpop.eup %1888 }
 0x388   :  { %1711 = vmatmul.msk.f32.gmra.mxu0 %vm986_vm1, %v1889_v57  ;;  %v1837_v35 = vpack.i.bf16 %v1887_v34, %v1889_v57  ;;  %v1181_v34 = vld [vmem:[%s2854_s13 + $0x18] sm:$0xff]  ;;  %v1180_v57 = vld [vmem:[%s2854_s13 + $0x10] sm:$0xff] }
 0x389   :  { %1220 = vmatpush.msra.mxu3 %v1181_v34  ;;  %v1876_v34 = vld [vmem:[%s2855_s14] ss:$0 sm:$0xff] }
 0x38a   :  { %1838 = vrot.lane.b32.xlu2 %v1837_v35, %s1948_s10  ;;  %v1189_v35 = vld [vmem:[%s2856_s15 + $0x10] sm:$0xff] }
 0x38b   :  { %1221 = vmatpush.msra.mxu3 %v1180_v57 }
 0x3dc   :  { %v1849_v51 = vpop.permute.xlu1 %1848 }
 0x3dd   :  { %v1022_v28 = vpop.f32.mrf.mxu0  ;;  %v1851_v6 = vunpack.i.h.bf16 %v1849_v51  ;;  %v1850_v61 = vunpack.i.l.bf16 %v1849_v51 }
 0x3de   :  { %v1040_v42 = vmul.f32 %v1022_v28, %v2914_v27  ;;  %v1179_v28 = vld [vmem:[%s2854_s13 + $0x8] sm:$0xff] }
 0x3df   :  { %1222 = vmatpush.msra.mxu3 %v1179_v28  ;;  %v2915_v28 = vld [vmem:[#allocation5_spill] sm:$0xff] }
 0x3e0   :  { %v1064_v55 = vsel %vm481_vm4, %v1040_v42, %v1851_v6 }
 0x3e4   :  { %v1839_v4 = vpop.permute.xlu2 %1838 }
 0x3e5   :  { %v1025_v45 = vpop.f32.mrf.mxu0  ;;  %v1840_v24 = vunpack.i.l.bf16 %v1839_v4  ;;  %v1841_v48 = vunpack.i.h.bf16 %v1839_v4 }
 0x3e6   :  { %v1041_v25 = vmul.f32 %v1025_v45, %v2912_v11  ;;  %v1188_v45 = vld [vmem:[%s2856_s15 + $0x8] sm:$0xff] }
 0x3e8   :  { %v1065_v40 = vsel %vm481_vm4, %v1041_v25, %v1850_v61 }
 0x3ec   :  { %v1844_v8 = vpop.permute.xlu0 %1843 }
 0x3ed   :  { %v1028_v9 = vpop.f32.mrf.mxu0  ;;  %v1846_v1 = vunpack.i.h.bf16 %v1844_v8  ;;  %v1845_v44 = vunpack.i.l.bf16 %v1844_v8 }
 0x3ee   :  { %v1042_v0 = vmul.f32 %v1028_v9, %v2911_v58 }
 0x3f0   :  { %v1066_v36 = vsel %vm481_vm4, %v1042_v0, %v1846_v1 }
 0x3f5   :  { %v1031_v22 = vpop.f32.mrf.mxu0 }
 0x3f6   :  { %v1043_v54 = vmul.f32 %v1031_v22, %v2910_v43  ;;  %v1178_v22 = vld [vmem:[%s2854_s13] sm:$0xff] }
 0x3f7   :  { %1223 = vmatpush.msra.mxu3 %v1178_v22  ;;  %v1874_v43 = vld [vmem:[%s2853_s12] ss:$0 sm:$0xff]  ;;  %v2918_v22 = vld [vmem:[#allocation6_spill] sm:$0xff] }
 0x3f8   :  { %v1067_v14 = vsel %vm481_vm4, %v1043_v54, %v1845_v44 }
 0x3fd   :  { %v1034_v47 = vpop.f32.mrf.mxu0 }
 0x3fe   :  { %v1044_v37 = vmul.f32 %v1034_v47, %v2908_v39  ;;  %v1187_v47 = vld [vmem:[%s2856_s15] sm:$0xff] }
 0x400   :  { %v1068_v59 = vsel %vm481_vm4, %v1044_v37, %v1841_v48 }
 0x405   :  { %v1037_v31 = vpop.f32.mrf.mxu0 }
 0x406   :  { %v1045_v12 = vmul.f32 %v1037_v31, %v2909_v32 }
 0x408   :  { %v1069_v38 = vsel %vm481_vm4, %v1045_v12, %v1840_v24 }
 0x409   :  { %1087 = vmatpush.msra.mxu1 %v1069_v38 }
 0x40b   :  { %1088 = vmatpush.msra.mxu1 %v1068_v59 }
 0x40d   :  { %1089 = vmatpush.msra.mxu1 %v1067_v14 }
 0x40f   :  { %1090 = vmatpush.msra.mxu1 %v1066_v36 }
 0x411   :  { %1091 = vmatpush.msra.mxu1 %v1065_v40 }
 0x413   :  { %1092 = vmatpush.msra.mxu1 %v1064_v55 }
 0x414   :  { %1712 = vmatmul.msk.f32.vlgmr.msra.gmra.mxu1 %vm1070_vm2, %v1768_v13 }
 0x415   :  { %1242 = vmatpush.msrb.mxu1 %v1194_v49 }
 0x417   :  { %1243 = vmatpush.msrb.mxu1 %v1193_v21 }
 0x419   :  { %1244 = vmatpush.msrb.mxu1 %v1192_v30  ;;  %v1875_v30 = vld [vmem:[%s2857_s16] ss:$0 sm:$0xff] }
 0x41b   :  { %1245 = vmatpush.msrb.mxu1 %v1191_v10 }
 0x41c   :  { %1713 = vmatmul.msk.f32.gmra.mxu1 %vm1070_vm2, %v1769_v41 }
 0x41d   :  { %1246 = vmatpush.msrb.mxu1 %v1190_v20 }
 0x41f   :  { %1247 = vmatpush.msrb.mxu1 %v1189_v35 }
 0x421   :  { %1248 = vmatpush.msrb.mxu1 %v1188_v45  ;;  %v2916_v45 = vunpack.c.l.bf16 %v2915_v28 }
 0x423   :  { %1249 = vmatpush.msrb.mxu1 %v1187_v47  ;;  %v2919_v47 = vunpack.c.l.bf16 %v2918_v22 }
 0x491   :  { %v1094_v63 = vpop.f32.mrf.mxu1 }
 0x492   :  { %1102 = vrot.lane.b32.xlu2 %v1094_v63, %s1948_s10 }
 0x499   :  { %v2641_v52 = vpop.f32.mrf.mxu1 }
 0x49a   :  { %1104 = vrot.lane.b32.xlu0 %v2641_v52, %s1948_s10  ;;  %s1641_s10 = sshll.u32 %s2861_s20, 4  ;;  %s1642_s10 = int_to_ptr.hbm [resolvable:$true] %s1641_s10 }
 0x4ec   :  { %v1103_v29 = vpop.permute.xlu2 %1102 }
 0x4ed   :  { %1714 = vmatmul.msk.f32.vlgmr.msra.gmra.mxu2 %vm986_vm1, %v1103_v29 }
 0x50c   :  { %v1105_v62 = vpop.permute.xlu0 %1104 }
 0x50d   :  { %1715 = vmatmul.msk.f32.gmra.mxu2 %vm986_vm1, %v1105_v62 }
 0x570   :  { %v1127_v9 = vpop.f32.mrf.mxu2 }
 0x571   :  { %1890 = vrcp.f32 %v1127_v9  ;;  %v1144_v39 = vand.u32 2147483648, %v1127_v9  ;;  %v1142_v32 = vand.u32 2147483647, %v1127_v9  ;;  %vm1138_vm5 = vweird.f32 %v1127_v9 }
 0x573   :  { %v1145_v8 = vor.u32 1.1754944e-38, %v1144_v39  ;;  %vm1143_vm7 = vcmp.eq.f32.partialorder %v1142_v32, 8.507059e+37  ;;  %v1196_v32 = vld [vmem:[%s2859_s18] sm:$0xff] }
 0x577   :  { %v1891_v4 = vpop.eup %1890 }
 0x578   :  { %v1134_v31 = vmul.f32 %v1891_v4, %v1127_v9  ;;  %vm1139_vm3 = vweird.f32 %v1891_v4  ;;  %v2917_v9 = vunpack.c.h.bf16 %v2915_v28  ;;  %v2929_v28 = vld [vmem:[#allocation13_spill] sm:$0xff] }
 0x579   :  { %vm1140_vm6 = vmor %vm1138_vm5, %vm1139_vm3 }
 0x57a   :  { %v1135_v24 = vsub.f32 1.0, %v1134_v31  ;;  %v2921_v31 = vld [vmem:[#allocation7_spill] sm:$0xff] }
 0x57b   :  { %v2923_v39 = vunpack.c.h.bf16 %v2921_v31 }
 0x57c   :  { %v1136_v37 = vmul.f32 %v1891_v4, %v1135_v24  ;;  %v2922_v24 = vunpack.c.l.bf16 %v2921_v31 }
 0x57e   :  { %v1137_v12 = vadd.f32 %v1891_v4, %v1136_v37  ;;  %v1197_v37 = vld [vmem:[%s2859_s18 + $0x8] sm:$0xff]  ;;  %s1949_s18 = smov 16  }
 0x57f   :  { %1389 = vmatpush.msra.mxu1 %v1197_v37 }
 0x580   :  { %v1141_v48 = vsel %vm1140_vm6, %v1891_v4, %v1137_v12  ;;  %v2920_v4 = vunpack.c.h.bf16 %v2918_v22 }
 0x581   :  { %v1146_v54 = vsel %vm1143_vm7, %v1145_v8, %v1141_v48  ;;  %1390 = vmatpush.msra.mxu1 %v1196_v32 }
 0x582   :  { %v1147_v38 = vmul.f32 %v1146_v54, %v1094_v63  ;;  %v2924_v54 = vld [vmem:[#allocation12_spill] sm:$0xff] }
 0x584   :  { %v1166_v1 = vadd.f32 %v1874_v43, %v1147_v38 }
 0x586   :  { %v1170_v44 = vmul.f32 1.442695, %v1166_v1  ;;  %vm1168_vm8 = vcmp.gt.f32.partialorder %v1166_v1, 0.0 }
 0x588   :  { %1892 = vpow2.f32 %v1170_v44 }
 0x58e   :  { %v1893_v58 = vpop.eup %1892 }
 0x58f   :  { %v1716_v0 = vadd.f32 -1.0, %v1893_v58 }
 0x590   :  { %v1130_v59 = vpop.f32.mrf.mxu2 }
 0x591   :  { %1894 = vrcp.f32 %v1130_v59  ;;  %v1176_v51 = vsel %vm1168_vm8, %v1166_v1, %v1716_v0  ;;  %v1159_v6 = vand.u32 2147483648, %v1130_v59  ;;  %v1157_v27 = vand.u32 2147483647, %v1130_v59 }
 0x592   :  { %1718 = vmatmul.msk.f32.vlgmr.msra.gmra.mxu3 %vm481_vm4, %v1176_v51  ;;  %1720 = vmatmul.msk.f32.vlgmr.msrb.gmra.mxu1 %vm481_vm4, %v1176_v51  ;;  %vm1153_vm10 = vweird.f32 %v1130_v59  ;;  %v2925_v51 = vld [vmem:[#allocation8_spill] sm:$0xff] }
 0x593   :  { %v1160_v36 = vor.u32 1.1754944e-38, %v1159_v6  ;;  %vm1158_vm12 = vcmp.eq.f32.partialorder %v1157_v27, 8.507059e+37 }
 0x597   :  { %v1895_v11 = vpop.eup %1894 }
 0x598   :  { %v1149_v25 = vmul.f32 %v1895_v11, %v1130_v59  ;;  %vm1154_vm9 = vweird.f32 %v1895_v11 }
 0x599   :  { %vm1155_vm11 = vmor %vm1153_vm10, %vm1154_vm9 }
 0x59a   :  { %v1150_v14 = vsub.f32 1.0, %v1149_v25 }
 0x59c   :  { %v1151_v61 = vmul.f32 %v1895_v11, %v1150_v14 }
 0x59e   :  { %v1152_v42 = vadd.f32 %v1895_v11, %v1151_v61 }
 0x5a0   :  { %v1156_v40 = vsel %vm1155_vm11, %v1895_v11, %v1152_v42  ;;  %v2926_v42 = vld [vmem:[#allocation9_spill] sm:$0xff] }
 0x5a1   :  { %v1161_v55 = vsel %vm1158_vm12, %v1160_v36, %v1156_v40 }
 0x5a2   :  { %v1162_v63 = vmul.f32 %v1161_v55, %v2641_v52 }
 0x5a4   :  { %v1167_v29 = vadd.f32 %v1874_v43, %v1162_v63 }
 0x5a6   :  { %v1172_v62 = vmul.f32 1.442695, %v1167_v29  ;;  %vm1169_vm13 = vcmp.gt.f32.partialorder %v1167_v29, 0.0 }
 0x5a8   :  { %1896 = vpow2.f32 %v1172_v62  ;;  %v2927_v62 = vld [vmem:[#allocation10_spill] sm:$0xff] }
 0x5ae   :  { %v1897_v56 = vpop.eup %1896 }
 0x5af   :  { %v1717_v49 = vadd.f32 -1.0, %v1897_v56 }
 0x5b1   :  { %v1177_v33 = vsel %vm1169_vm13, %v1167_v29, %v1717_v49 }
 0x5b2   :  { %1719 = vmatmul.msk.f32.gmra.mxu3 %vm481_vm4, %v1177_v33  ;;  %1721 = vmatmul.msk.f32.gmra.mxu1 %vm481_vm4, %v1177_v33 }
 0x60f   :  { %v1251_v21 = vpop.f32.mrf.mxu1 }
 0x610   :  { %v1252_v52 = vadd.f32 %v1875_v30, %v1251_v21 }
 0x615   :  { %v1225_v2 = vpop.f32.mrf.mxu3 }
 0x616   :  { %v1226_v35 = vadd.f32 %v1876_v34, %v1225_v2 }
 0x62f   :  { %v1254_v46 = vpop.f32.mrf.mxu1 }
 0x630   :  { %v1255_v10 = vadd.f32 %v1875_v30, %v1254_v46  ;;  %v2928_v46 = vld [vmem:[#allocation11_spill] sm:$0xff] }
 0x632   :  { %1306 = vmatpush.msrb.mxu3 %v1255_v10 }
 0x634   :  { %1307 = vmatpush.msrb.mxu3 %v1252_v52 }
 0x635   :  { %v1228_v20 = vpop.f32.mrf.mxu3  ;;  %1728 = vmatmul.msk.f32.vlgmr.msrb.gmra.mxu3 %vm226_vm0, %v2074_v5 }
 0x636   :  { %v1229_v57 = vadd.f32 %v1876_v34, %v1228_v20 }
 0x638   :  { %1271 = vmatpush.msrb.mxu2 %v1229_v57 }
 0x63a   :  { %1272 = vmatpush.msrb.mxu2 %v1226_v35 }
 0x63b   :  { %1722 = vmatmul.msk.f32.vlgmr.msrb.gmra.mxu2 %vm226_vm0, %v2916_v45 }
 0x63d   :  { %1729 = vmatmul.msk.f32.gmra.mxu3 %vm226_vm0, %v2082_v7 }
 0x643   :  { %1723 = vmatmul.msk.f32.gmra.mxu2 %vm226_vm0, %v2917_v9 }
 0x645   :  { %1730 = vmatmul.msk.f32.gmra.mxu3 %vm226_vm0, %v2115_v15 }
 0x64b   :  { %1724 = vmatmul.msk.f32.gmra.mxu2 %vm226_vm0, %v2919_v47 }
 0x64d   :  { %1731 = vmatmul.msk.f32.gmra.mxu3 %vm226_vm0, %v2128_v18 }
 0x653   :  { %1725 = vmatmul.msk.f32.gmra.mxu2 %vm226_vm0, %v2920_v4 }
 0x655   :  { %1732 = vmatmul.msk.f32.gmra.mxu3 %vm226_vm0, %v2149_v23 }
 0x65b   :  { %1726 = vmatmul.msk.f32.gmra.mxu2 %vm226_vm0, %v2922_v24 }
 0x65d   :  { %1733 = vmatmul.msk.f32.gmra.mxu3 %vm226_vm0, %v2162_v26 }
 0x663   :  { %1727 = vmatmul.msk.f32.gmra.mxu2 %vm226_vm0, %v2923_v39 }
 0x6b8   :  { %v1309_v12 = vpop.f32.mrf.mxu3 }
 0x6be   :  { %v2745_v8 = vpop.f32.mrf.mxu2 }
 0x6bf   :  { %v1327_v48 = vadd.f32 %v1309_v12, %v2745_v8 }
 0x6c0   :  { %v1312_v43 = vpop.f32.mrf.mxu3 }
 0x6c1   :  { %v1333_v38 = vadd.f32 %v1327_v48, %v2924_v54 }
 0x6c3   :  { %vm1339_vm4 = vcmp.gt.f32.partialorder %v1333_v38, 0.0  ;;  %v1345_v1 = vmul.f32 0.2, %v1333_v38 }
 0x6c5   :  { %v1351_v44 = vsel %vm1339_vm4, %v1333_v38, %v1345_v1 }
 0x6c6   :  { %v2749_v58 = vpop.f32.mrf.mxu2  ;;  %1734 = vmatmul.msk.f32.vlgmr.msra.gmra.mxu1 %vm226_vm0, %v1351_v44 }
 0x6c7   :  { %v1328_v0 = vadd.f32 %v1312_v43, %v2749_v58 }
 0x6c8   :  { %v1315_v59 = vpop.f32.mrf.mxu3 }
 0x6c9   :  { %v1334_v11 = vadd.f32 %v1328_v0, %v2925_v51 }
 0x6cb   :  { %vm1340_vm14 = vcmp.gt.f32.partialorder %v1334_v11, 0.0  ;;  %v1346_v25 = vmul.f32 0.2, %v1334_v11 }
 0x6cd   :  { %v1352_v14 = vsel %vm1340_vm14, %v1334_v11, %v1346_v25 }
 0x6ce   :  { %v2754_v6 = vpop.f32.mrf.mxu2  ;;  %1735 = vmatmul.msk.f32.gmra.mxu1 %vm226_vm0, %v1352_v14 }
 0x6cf   :  { %v1329_v61 = vadd.f32 %v1315_v59, %v2754_v6 }
 0x6d0   :  { %v1318_v27 = vpop.f32.mrf.mxu3 }
 0x6d1   :  { %v1335_v36 = vadd.f32 %v1329_v61, %v2926_v42 }
 0x6d3   :  { %vm1341_vm15 = vcmp.gt.f32.partialorder %v1335_v36, 0.0  ;;  %v1347_v40 = vmul.f32 0.2, %v1335_v36 }
 0x6d5   :  { %v1353_v55 = vsel %vm1341_vm15, %v1335_v36, %v1347_v40 }
 0x6d6   :  { %v2759_v63 = vpop.f32.mrf.mxu2  ;;  %1736 = vmatmul.msk.f32.gmra.mxu1 %vm226_vm0, %v1353_v55 }
 0x6d7   :  { %v1330_v29 = vadd.f32 %v1318_v27, %v2759_v63 }
 0x6d8   :  { %v1321_v49 = vpop.f32.mrf.mxu3 }
 0x6d9   :  { %v1336_v56 = vadd.f32 %v1330_v29, %v2927_v62 }
 0x6db   :  { %vm1342_vm1 = vcmp.gt.f32.partialorder %v1336_v56, 0.0  ;;  %v1348_v33 = vmul.f32 0.2, %v1336_v56 }
 0x6dd   :  { %v1354_v21 = vsel %vm1342_vm1, %v1336_v56, %v1348_v33 }
 0x6de   :  { %v2764_v2 = vpop.f32.mrf.mxu2  ;;  %1737 = vmatmul.msk.f32.gmra.mxu1 %vm226_vm0, %v1354_v21 }
 0x6df   :  { %v1331_v30 = vadd.f32 %v1321_v49, %v2764_v2 }
 0x6e0   :  { %v1324_v34 = vpop.f32.mrf.mxu3 }
 0x6e1   :  { %v1337_v10 = vadd.f32 %v1331_v30, %v2928_v46 }
 0x6e3   :  { %vm1343_vm3 = vcmp.gt.f32.partialorder %v1337_v10, 0.0  ;;  %v1349_v52 = vmul.f32 0.2, %v1337_v10 }
 0x6e5   :  { %v1355_v20 = vsel %vm1343_vm3, %v1337_v10, %v1349_v52 }
 0x6e6   :  { %v2769_v57 = vpop.f32.mrf.mxu2  ;;  %1738 = vmatmul.msk.f32.gmra.mxu1 %vm226_vm0, %v1355_v20 }
 0x6e7   :  { %v1332_v35 = vadd.f32 %v1324_v34, %v2769_v57 }
 0x6e9   :  { %v1338_v45 = vadd.f32 %v1332_v35, %v2929_v28 }
 0x6eb   :  { %vm1344_vm5 = vcmp.gt.f32.partialorder %v1338_v45, 0.0  ;;  %v1350_v9 = vmul.f32 0.2, %v1338_v45 }
 0x6ed   :  { %v1356_v22 = vsel %vm1344_vm5, %v1338_v45, %v1350_v9 }
 0x6ee   :  { %1739 = vmatmul.msk.f32.gmra.mxu1 %vm226_vm0, %v1356_v22 }
 0x743   :  { %v2775_v47 = vpop.f32.mrf.mxu1 }
 0x744   :  { %1412 = vperm.xlu1 %1852, %v2775_v47  }
 0x74b   :  { %v2778_v4 = vpop.f32.mrf.mxu1 }
 0x74c   :  { %1417 = vperm.xlu2 %1853, %v2778_v4  }
 0x753   :  { %v2781_v31 = vpop.f32.mrf.mxu1 }
 0x754   :  { %1422 = vperm.xlu2 %1853, %v2781_v31  }
 0x75b   :  { %v2784_v24 = vpop.f32.mrf.mxu1 }
 0x763   :  { %v1404_v39 = vpop.f32.mrf.mxu1 }
 0x764   :  { %1432 = vperm.xlu0 %1854, %v1404_v39  }
 0x76b   :  { %v1407_v37 = vpop.f32.mrf.mxu1 }
 0x76c   :  { %1437 = vperm.xlu1 %1852, %v1407_v37  }
 0x774   :  { %1427 = vperm.xlu1 %1852, %v2784_v24  }
 0x7a6   :  { %v1418_v12 = vpop.permute.xlu2 %1417 }
 0x7a7   :  { %v1441_v38 = vadd.f32 %v1418_v12, %v2439_v50 }
 0x7a9   :  { %v1447_v51 = vsel %vm226_vm0, %v1441_v38, -inf }
 0x7ae   :  { %v1423_v44 = vpop.permute.xlu2 %1422 }
 0x7af   :  { %v1442_v11 = vadd.f32 %v1423_v44, %v2442_v60 }
 0x7b6   :  { %v1413_v32 = vpop.permute.xlu1 %1412 }
 0x7b7   :  { %v1440_v0 = vadd.f32 %v1413_v32, %v2437_v53 }
 0x7b9   :  { %v1446_v27 = vsel %vm226_vm0, %v1440_v0, -inf }
 0x7d6   :  { %v1433_v48 = vpop.permute.xlu0 %1432 }
 0x7d7   :  { %v1444_v1 = vadd.f32 %v1433_v48, %v2444_v19  ;;  %v1448_v19 = vsel %vm226_vm0, %v1442_v11, -inf }
 0x7d9   :  { %v1450_v25 = vsel %vm226_vm0, %v1444_v1, -inf }
 0x7da   :  { %v1451_v50 = vmax.f32 %v1446_v27, %v1450_v25 }
 0x7de   :  { %v1438_v43 = vpop.permute.xlu1 %1437 }
 0x7df   :  { %v1445_v54 = vadd.f32 %v1438_v43, %v2429_v17 }
 0x7e1   :  { %v1452_v59 = vsel %vm226_vm0, %v1445_v54, -inf }
 0x7e2   :  { %v1453_v14 = vmax.f32 %v1447_v51, %v1452_v59 }
 0x7e4   :  { %v1454_v53 = vmax.f32 %v1451_v50, %v1453_v14 }
 0x7e6   :  { %v1428_v61 = vpop.permute.xlu1 %1427 }
 0x7e7   :  { %v1443_v17 = vadd.f32 %v1428_v61, %v2432_v3 }
 0x7e9   :  { %v1449_v42 = vsel %vm226_vm0, %v1443_v17, -inf  ;;  %v1950_v17 = vmov 16  }
 0x7ea   :  { %v1455_v36 = vmax.f32 %v1448_v19, %v1449_v42 }
 0x7ec   :  { %v1456_v40 = vmax.f32 %v1454_v53, %v1455_v36 }
 0x7ee   :  { %v1457_v55 = vrot.slane %v1456_v40, 4 }
 0x7f0   :  { %v1458_v29 = vmax.f32 %v1456_v40, %v1457_v55 }
 0x7f2   :  { %v1459_v62 = vrot.slane %v1458_v29, 2 }
 0x7f4   :  { %v1460_v60 = vmax.f32 %v1458_v29, %v1459_v62 }
 0x7f6   :  { %v1461_v56 = vrot.slane %v1460_v60, 1 }
 0x7f8   :  { %v1462_v49 = vmax.f32 %v1460_v60, %v1461_v56 }
 0x7fa   :  { %v1468_v33 = vmul.f32 %v2162_v26, %v1462_v49  ;;  %v1467_v21 = vmul.f32 %v2149_v23, %v1462_v49  ;;  %v1466_v3 = vmul.f32 %v2128_v18, %v1462_v49  ;;  %v1465_v52 = vmul.f32 %v2115_v15, %v1462_v49 }
 0x7fb   :  { %v1463_v34 = vmul.f32 %v2074_v5, %v1462_v49  ;;  %v1464_v18 = vmul.f32 %v2082_v7, %v1462_v49 }
 0x7fc   :  { %v1484_v30 = vsel %vm226_vm0, %v1468_v33, 0.0  ;;  %v1481_v46 = vsel %vm226_vm0, %v1467_v21, 0.0  ;;  %v1478_v10 = vsel %vm226_vm0, %v1466_v3, 0.0  ;;  %v1475_v20 = vsel %vm226_vm0, %v1465_v52, 0.0 }
 0x7fd   :  { %1485 = vadd.xlane.f32.xlu2 %v1484_v30  ;;  %1482 = vadd.xlane.f32.xlu0 %v1481_v46  ;;  %v1469_v26 = vsel %vm226_vm0, %v1463_v34, 0.0  ;;  %v1472_v23 = vsel %vm226_vm0, %v1464_v18, 0.0 }
 0x7fe   :  { %1479 = vadd.xlane.f32.xlu1 %v1478_v10 }
 0x805   :  { %1476 = vadd.xlane.f32.xlu2 %v1475_v20  ;;  %1470 = vadd.xlane.f32.xlu0 %v1469_v26 }
 0x80d   :  { %1473 = vadd.xlane.f32.xlu2 %v1472_v23 }
 0x870   :  { %v1486_v35 = vpop.xlane.xlu2 %1485  ;;  %v1483_v28 = vpop.xlane.xlu0 %1482 }
 0x871   :  { %v1492_v45 = vsub.f32 %v1407_v37, %v1486_v35  ;;  %v1491_v9 = vsub.f32 %v1404_v39, %v1483_v28  ;;  %v1480_v22 = vpop.xlane.xlu1 %1479 }
 0x872   :  { %v1490_v5 = vsub.f32 %v2784_v24, %v1480_v22  ;;  %v1877_v22 = vld [vmem:[%s2860_s19] ss:$0 sm:$0xff]  ;;  %s1951_s19 = smov [#allocation2]  }
 0x873   :  { %v1503_v32 = vmul.f32 1.442695, %v1492_v45  ;;  %v1501_v15 = vmul.f32 1.442695, %v1491_v9  ;;  %s1639_s5 = sshll.u32 %s1951_s19, 4  ;;  %s1640_s5 = int_to_ptr.vmem [resolvable:$true] %s1639_s5 }
 0x874   :  { %v1499_v12 = vmul.f32 1.442695, %v1490_v5 }
 0x875   :  { %1898 = vpow2.f32 %v1503_v32 }
 0x876   :  { %1900 = vpow2.f32 %v1501_v15 }
 0x877   :  { %1902 = vpow2.f32 %v1499_v12 }
 0x878   :  { %v1477_v48 = vpop.xlane.xlu2 %1476  ;;  %v1471_v54 = vpop.xlane.xlu0 %1470 }
 0x879   :  { %v1489_v43 = vsub.f32 %v2781_v31, %v1477_v48  ;;  %v1487_v44 = vsub.f32 %v2775_v47, %v1471_v54 }
 0x87b   :  { %v1899_v7 = vpop.eup %1898  ;;  %v1497_v38 = vmul.f32 1.442695, %v1489_v43  ;;  %v1493_v24 = vmul.f32 1.442695, %v1487_v44 }
 0x87c   :  { %v1901_v1 = vpop.eup %1900  ;;  %1532 = vperm.xlu1 %1852, %v1899_v7  }
 0x87d   :  { %1904 = vpow2.f32 %v1497_v38  ;;  %1527 = vperm.xlu2 %1853, %v1901_v1   ;;  %v1855_v39 = vpack.i.bf16 %v1901_v1, %v1899_v7  ;;  %v1903_v59 = vpop.eup %1902 }
 0x87e   :  { %1906 = vpow2.f32 %v1493_v24 }
 0x87f   :  { %1856 = vrot.lane.b32.xlu0 %v1855_v39, %s1949_s18 }
 0x880   :  { %v1474_v37 = vpop.xlane.xlu2 %1473 }
 0x881   :  { %v1488_v0 = vsub.f32 %v2778_v4, %v1474_v37 }
 0x883   :  { %v1905_v51 = vpop.eup %1904  ;;  %v1495_v31 = vmul.f32 1.442695, %v1488_v0 }
 0x884   :  { %1522 = vperm.xlu1 %1852, %v1903_v59   ;;  %v1860_v11 = vpack.i.bf16 %v1905_v51, %v1903_v59  ;;  %v1907_v47 = vpop.eup %1906 }
 0x885   :  { %1908 = vpow2.f32 %v1495_v31 }
 0x886   :  { %1861 = vrot.lane.b32.xlu2 %v1860_v11, %s1949_s18 }
 0x887   :  { %1517 = vperm.xlu0 %1854, %v1905_v51  }
 0x88b   :  { %v1909_v25 = vpop.eup %1908 }
 0x88c   :  { %1512 = vperm.xlu1 %1852, %v1909_v25   ;;  %v1865_v14 = vpack.i.bf16 %v1907_v47, %v1909_v25 }
 0x88e   :  { %1866 = vrot.lane.b32.xlu2 %v1865_v14, %s1949_s18 }
 0x88f   :  { %1507 = vperm.xlu0 %1854, %v1907_v47  }
 0x894   :  { %1870 = vset.pattern.permute.xlu1 %v1950_v17 }
 0x897   :  { %1871 = vset.pattern.permute.xlu0 %v1950_v17 }
 0x8d7   :  { %v1528_v61 = vpop.permute.xlu2 %1527 }
 0x8d8   :  { %v1539_v36 = vmul.f32 %v1528_v61, %v2764_v2 }
 0x8e0   :  { %v1862_v50 = vpop.permute.xlu2 %1861 }
 0x8e1   :  { %v1863_v62 = vunpack.i.l.bf16 %v1862_v50  ;;  %v1864_v33 = vunpack.i.h.bf16 %v1862_v50 }
 0x8e8   :  { %v1867_v21 = vpop.permute.xlu2 %1866 }
 0x8e9   :  { %v1868_v30 = vunpack.i.l.bf16 %v1867_v21 }
 0x8ee   :  { %v1533_v27 = vpop.permute.xlu1 %1532 }
 0x8ef   :  { %v1540_v19 = vmul.f32 %v1533_v27, %v2769_v57 }
 0x8f1   :  { %v1857_v4 = vpop.permute.xlu0 %1856 }
 0x8f2   :  { %v1859_v42 = vunpack.i.h.bf16 %v1857_v4  ;;  %v1858_v53 = vunpack.i.l.bf16 %v1857_v4 }
 0x8f4   :  { %v1564_v40 = vsel %vm226_vm0, %v1540_v19, %v1858_v53  ;;  %v1563_v29 = vsel %vm226_vm0, %v1539_v36, %v1859_v42 }
 0x8f5   :  { %1575 = vmatpush.msra.mxu0 %v1564_v40 }
 0x8f6   :  { %v1523_v55 = vpop.permute.xlu1 %1522 }
 0x8f7   :  { %v1538_v60 = vmul.f32 %v1523_v55, %v2759_v63  ;;  %1576 = vmatpush.msra.mxu0 %v1563_v29  ;;  %v1869_v63 = vunpack.i.h.bf16 %v1867_v21 }
 0x8f9   :  { %v1518_v56 = vpop.permute.xlu0 %1517  ;;  %v1562_v49 = vsel %vm226_vm0, %v1538_v60, %v1863_v62 }
 0x8fa   :  { %v1537_v57 = vmul.f32 %v1518_v56, %v2754_v6  ;;  %1577 = vmatpush.msra.mxu0 %v1562_v49 }
 0x8fc   :  { %v1561_v2 = vsel %vm226_vm0, %v1537_v57, %v1864_v33 }
 0x8fd   :  { %1578 = vmatpush.msra.mxu0 %v1561_v2 }
 0x8fe   :  { %v1513_v3 = vpop.permute.xlu1 %1512 }
 0x8ff   :  { %v1536_v46 = vmul.f32 %v1513_v3, %v2749_v58 }
 0x901   :  { %v1508_v10 = vpop.permute.xlu0 %1507  ;;  %v1560_v52 = vsel %vm226_vm0, %v1536_v46, %v1868_v30 }
 0x902   :  { %v1535_v34 = vmul.f32 %v1508_v10, %v2745_v8  ;;  %1579 = vmatpush.msra.mxu0 %v1560_v52 }
 0x904   :  { %v1559_v20 = vsel %vm226_vm0, %v1535_v34, %v1869_v63 }
 0x905   :  { %1580 = vmatpush.msra.mxu0 %v1559_v20 }
 0x906   :  { %1740 = vmatmul.msk.f32.vlgmr.msra.gmra.mxu0 %vm1070_vm2, %v1768_v13 }
 0x90e   :  { %1741 = vmatmul.msk.f32.gmra.mxu0 %vm1070_vm2, %v1769_v41 }
 0x983   :  { %v1582_v6 = vpop.f32.mrf.mxu0 }
 0x984   :  { %1590 = vperm.xlu1 %1870, %v1582_v6  }
 0x98b   :  { %v1585_v58 = vpop.f32.mrf.mxu0 }
 0x98c   :  { %1595 = vperm.xlu0 %1871, %v1585_v58  }
 0x9f6   :  { %v1591_v26 = vpop.permute.xlu1 %1590 }
 0x9f7   :  { %1910 = vrcp.f32 %v1591_v26  ;;  %v1609_v28 = vand.u32 2147483648, %v1591_v26  ;;  %v1607_v9 = vand.u32 2147483647, %v1591_v26  ;;  %vm1603_vm7 = vweird.f32 %v1591_v26 }
 0x9f9   :  { %v1610_v41 = vor.u32 1.1754944e-38, %v1609_v28  ;;  %vm1608_vm2 = vcmp.eq.f32.partialorder %v1607_v9, 8.507059e+37 }
 0x9fd   :  { %v1911_v18 = vpop.eup %1910 }
 0x9fe   :  { %v1599_v8 = vmul.f32 %v1911_v18, %v1591_v26  ;;  %v1596_v23 = vpop.permute.xlu0 %1595  ;;  %vm1604_vm6 = vweird.f32 %v1911_v18 }
 0x9ff   :  { %1912 = vrcp.f32 %v1596_v23  ;;  %vm1605_vm8 = vmor %vm1603_vm7, %vm1604_vm6  ;;  %v1624_v43 = vand.u32 2147483648, %v1596_v23  ;;  %v1622_v38 = vand.u32 2147483647, %v1596_v23  ;;  %vm1618_vm10 = vweird.f32 %v1596_v23 }
 0xa00   :  { %v1600_v35 = vsub.f32 1.0, %v1599_v8 }
 0xa01   :  { %v1625_v44 = vor.u32 1.1754944e-38, %v1624_v43  ;;  %vm1623_vm12 = vcmp.eq.f32.partialorder %v1622_v38, 8.507059e+37 }
 0xa02   :  { %v1601_v45 = vmul.f32 %v1911_v18, %v1600_v35 }
 0xa04   :  { %v1602_v13 = vadd.f32 %v1911_v18, %v1601_v45 }
 0xa05   :  { %v1913_v16 = vpop.eup %1912 }
 0xa06   :  { %v1606_v32 = vsel %vm1605_vm8, %v1911_v18, %v1602_v13  ;;  %v1614_v15 = vmul.f32 %v1913_v16, %v1596_v23  ;;  %vm1619_vm9 = vweird.f32 %v1913_v16 }
 0xa07   :  { %v1611_v5 = vsel %vm1608_vm2, %v1610_v41, %v1606_v32  ;;  %vm1620_vm11 = vmor %vm1618_vm10, %vm1619_vm9 }
 0xa08   :  { %v1612_v12 = vmul.f32 %v1611_v5, %v1582_v6  ;;  %v1615_v48 = vsub.f32 1.0, %v1614_v15 }
 0xa0a   :  { %v1631_v54 = vadd.f32 %v1877_v22, %v1612_v12  ;;  %v1616_v7 = vmul.f32 %v1913_v16, %v1615_v48 }
 0xa0c   :  { %1633 = vst.msk [vmem:[#allocation2] sm:$0xff] %vm226_vm0, %v1631_v54  ;;  %v1617_v1 = vadd.f32 %v1913_v16, %v1616_v7 }
 0xa0e   :  { %v1621_v39 = vsel %vm1620_vm11, %v1913_v16, %v1617_v1 }
 0xa0f   :  { %v1626_v24 = vsel %vm1623_vm12, %v1625_v44, %v1621_v39 }
 0xa10   :  { %v1627_v37 = vmul.f32 %v1626_v24, %v1585_v58 }
 0xa12   :  { %v1632_v0 = vadd.f32 %v1877_v22, %v1627_v37 }
 0xa14   :  { %1634 = vst.msk [vmem:[#allocation2 + $0x8] sm:$0xff] %vm226_vm0, %v1632_v0 }
 0xa15   :  { %1647 = dma.vmem_to_hbm [thread:$0]  %s1640_s5, 256, %s1642_s10, [#allocation3], %s1952_s11, %s1952_s11, %s1953_s7  }
 0xa16   :  { %1938 = dma.done.wait [#allocation3], 256  }
 0xa17   :  { %1939 = vsyncadd [#allocation3], 4294967040 }
 0xa18   :  { %1652 = vsyncpa [#allocation3], 1 }

</bundles_post_ra>
